<compile_context>
chip_gen: v7x
topology: tpu7x:2x2x1
jax: 0.10.0
libtpu: 0.0.40
codegen_flags: <defaults>
</compile_context>

<pallas_src>
import math

import numpy as np
import jax
import jax.numpy as jnp
from jax.experimental import pallas as pl
from jax.experimental.pallas import tpu as pltpu

ATOM_HIDDEN = 64
EDGE_HIDDEN = 128
NUM_HEADS = 4                        # CGConvWithAttention(num_heads=4)
HEAD_DIM = ATOM_HIDDEN // NUM_HEADS  # 16
NUM_PAIRS = NUM_HEADS * NUM_HEADS    # 16 (query-head, key-head) pairs
PAIR_WIDTH = NUM_PAIRS * HEAD_DIM    # 256
LN_EPS = 1e-5
LAYER_NUMS = 4
L1_NUM = 4
L2_NUM = 4

MAX_NODE_TILE = 2048
MAX_EDGE_TILE = 1024
ROW_ALIGN = 16                        # bf16-packed sublane alignment
VMEM_LIMIT_BYTES = 48 * 1024 * 1024   # below v7x 64 MiB physical; fine on v5e/v6e


# ----------------------------- small helpers --------------------------------

def _gelu(x):
    # exact (erf) GELU, matches torch.nn.GELU default
    return 0.5 * x * (1.0 + jax.lax.erf(x * math.sqrt(0.5)))


def _round_up(n, m):
    return ((n + m - 1) // m) * m


def _row_tiling(n, max_tile):
    # >= 2 grid steps (v7x dual-TC megacore) and minimal padding, tile % 16 == 0.
    n = max(n, 1)
    steps = max(2, -(-n // max_tile))
    tile = _round_up(-(-n // steps), ROW_ALIGN)
    return tile, steps * tile


def _pad_rows(a, n_pad):
    pad = n_pad - a.shape[0]
    if pad == 0:
        return a
    return jnp.concatenate([a, jnp.zeros((pad,) + a.shape[1:], a.dtype)], axis=0)


def _full_spec(a):
    nd = a.ndim
    return pl.BlockSpec(a.shape, lambda *idx, _nd=nd: (0,) * _nd)


def _cparams():
    return pltpu.CompilerParams(dimension_semantics=("parallel",),
                                vmem_limit_bytes=VMEM_LIMIT_BYTES)


# ------------------------------- kernels -------------------------------------

def _linear_ln_kernel(x_ref, w_ref, b_ref, g_ref, beta_ref, o_ref):
    # LayerNorm(Linear(x));  w_ref is bf16, accumulation in f32, LN in f32
    y = jnp.dot(x_ref[...].astype(jnp.bfloat16), w_ref[...],
                preferred_element_type=jnp.float32) + b_ref[...]
    mu = jnp.mean(y, axis=-1, keepdims=True)
    var = jnp.mean(jnp.square(y - mu), axis=-1, keepdims=True)
    o_ref[...] = (y - mu) * jax.lax.rsqrt(var + LN_EPS) * g_ref[...] + beta_ref[...]


def _ln_residual_kernel(agg_ref, x_ref, g_ref, b_ref, o_ref):
    # out = LayerNorm(agg) + x      (CGConvWithAttention epilogue)
    y = agg_ref[...]
    mu = jnp.mean(y, axis=-1, keepdims=True)
    var = jnp.mean(jnp.square(y - mu), axis=-1, keepdims=True)
    o_ref[...] = (y - mu) * jax.lax.rsqrt(var + LN_EPS) * g_ref[...] + b_ref[...] + x_ref[...]


def _ln_residual_mlp_kernel(agg_ref, x_ref, g_ref, b_ref, w_ref, wb_ref, o_ref):
    # out = l1-MLP(LayerNorm(agg) + x): last CGConv epilogue fused with the 4-layer
    # gelu(Linear(.)) stack (l1 weights are tiny and VMEM-resident).
    y = agg_ref[...]
    mu = jnp.mean(y, axis=-1, keepdims=True)
    var = jnp.mean(jnp.square(y - mu), axis=-1, keepdims=True)
    h = (y - mu) * jax.lax.rsqrt(var + LN_EPS) * g_ref[...] + b_ref[...] + x_ref[...]
    for l in range(L1_NUM):
        h = _gelu(jnp.dot(h.astype(jnp.bfloat16), w_ref[l],
                          preferred_element_type=jnp.float32) + wb_ref[l])
    o_ref[...] = h


def _edge_message_kernel(xi_ref, xj_ref, ea_ref,
                         wfi_ref, wfj_ref, wfe_ref, bfs_ref,
                         wqkv_ref, bqkv_ref,
                         r_ref, d_ref, a_ref,
                         pwo_ref, bo_ref, o_ref):
    bf16 = jnp.bfloat16
    f32 = jnp.float32

    # fused lin_f || lin_s over the three row-blocks of z = [x_i, x_j, edge_attr]
    # (x_i / x_j / ea already stream in as bf16; f32 accumulation)
    fs = (jnp.dot(xi_ref[...], wfi_ref[...], preferred_element_type=f32)
          + jnp.dot(xj_ref[...], wfj_ref[...], preferred_element_type=f32)
          + jnp.dot(ea_ref[...], wfe_ref[...], preferred_element_type=f32)
          + bfs_ref[...])                                   # (TE, 128)
    g = _gelu(fs)
    msg = g[:, :ATOM_HIDDEN] * g[:, ATOM_HIDDEN:]           # gelu(lin_f)*gelu(lin_s), (TE, 64)

    # one matmul producing the head-pair-expanded Q/K/V:
    #   lanes [0:256)   : Q_big  (query head i replicated over key heads j, scale folded in)
    #   lanes [256:512) : K_big  (key head j replicated over query heads i)
    #   lanes [512:768) : V_big  (value head j replicated over query heads i)
    qkv = (jnp.dot(msg.astype(bf16), wqkv_ref[...], preferred_element_type=f32)
           + bqkv_ref[...])                                 # (TE, 768)
    qb = qkv[:, 0:PAIR_WIDTH]
    kb = qkv[:, PAIR_WIDTH:2 * PAIR_WIDTH]
    vb = qkv[:, 2 * PAIR_WIDTH:3 * PAIR_WIDTH]

    # head-pair scores: lane p = i*NUM_HEADS + j  ->  scale * q_i . k_j
    scores = jnp.dot(qb * kb, r_ref[...], preferred_element_type=f32)      # (TE, 16)

    # softmax over j within each query-head group of 4 lanes.  A single per-row shift
    # (max over all 16 pairs) is used: softmax is shift-invariant per group and this
    # avoids per-group cross-lane maxima while staying overflow-safe.
    m = jnp.max(scores, axis=-1, keepdims=True)
    e = jnp.exp(scores - m)
    den = jnp.dot(e, d_ref[...], preferred_element_type=f32)               # per-group sums
    attn = e * pl.reciprocal(den, approx=True)                             # EUP, not VALU

    # context + head re-pack + out_proj: P@Wo was precomposed at trace time, so the
    # epilogue is a single (TE,256)x(256,64) matmul.
    attn_big = jnp.dot(attn, a_ref[...], preferred_element_type=f32)       # (TE, 256)
    o_ref[...] = (jnp.dot((attn_big * vb).astype(bf16), pwo_ref[...],
                          preferred_element_type=f32) + bo_ref[...])


# ------------------------------ pallas wrappers -------------------------------

def linear_layernorm(x, w, b, gamma, beta, tile):
    n, fin = x.shape
    fout = w.shape[1]
    wb = w.astype(jnp.bfloat16)
    cost = pl.CostEstimate(flops=2 * n * fin * fout + 10 * n * fout,
                           transcendentals=0,
                           bytes_accessed=n * (fin + fout) * 4 + fin * fout * 2)
    return pl.pallas_call(
        _linear_ln_kernel,
        out_shape=jax.ShapeDtypeStruct((n, fout), jnp.float32),
        grid=(n // tile,),
        in_specs=[pl.BlockSpec((tile, fin), lambda i: (i, 0)),
                  _full_spec(wb), _full_spec(b), _full_spec(gamma), _full_spec(beta)],
        out_specs=pl.BlockSpec((tile, fout), lambda i: (i, 0)),
        compiler_params=_cparams(),
        cost_estimate=cost,
    )(x, wb, b, gamma, beta)


def ln_residual(agg, x, gamma, beta, tile):
    n = agg.shape[0]
    cost = pl.CostEstimate(flops=12 * n * ATOM_HIDDEN, transcendentals=0,
                           bytes_accessed=3 * n * ATOM_HIDDEN * 4)
    return pl.pallas_call(
        _ln_residual_kernel,
        out_shape=jax.ShapeDtypeStruct((n, ATOM_HIDDEN), jnp.float32),
        grid=(n // tile,),
        in_specs=[pl.BlockSpec((tile, ATOM_HIDDEN), lambda i: (i, 0)),
                  pl.BlockSpec((tile, ATOM_HIDDEN), lambda i: (i, 0)),
                  _full_spec(gamma), _full_spec(beta)],
        out_specs=pl.BlockSpec((tile, ATOM_HIDDEN), lambda i: (i, 0)),
        compiler_params=_cparams(),
        cost_estimate=cost,
    )(agg, x, gamma, beta)


def ln_residual_mlp(agg, x, gamma, beta, w_stack, b_stack, tile):
    n = agg.shape[0]
    cost = pl.CostEstimate(
        flops=n * (12 * ATOM_HIDDEN + L1_NUM * 2 * ATOM_HIDDEN * ATOM_HIDDEN),
        transcendentals=n * L1_NUM * ATOM_HIDDEN,
        bytes_accessed=3 * n * ATOM_HIDDEN * 4 + L1_NUM * ATOM_HIDDEN * ATOM_HIDDEN * 2)
    return pl.pallas_call(
        _ln_residual_mlp_kernel,
        out_shape=jax.ShapeDtypeStruct((n, ATOM_HIDDEN), jnp.float32),
        grid=(n // tile,),
        in_specs=[pl.BlockSpec((tile, ATOM_HIDDEN), lambda i: (i, 0)),
                  pl.BlockSpec((tile, ATOM_HIDDEN), lambda i: (i, 0)),
                  _full_spec(gamma), _full_spec(beta),
                  _full_spec(w_stack), _full_spec(b_stack)],
        out_specs=pl.BlockSpec((tile, ATOM_HIDDEN), lambda i: (i, 0)),
        compiler_params=_cparams(),
        cost_estimate=cost,
    )(agg, x, gamma, beta, w_stack, b_stack)


def edge_messages(x_i, x_j, edge_attr, wm, tile_e):
    e = x_i.shape[0]
    consts = [wm['Wfi'], wm['Wfj'], wm['Wfe'], wm['bfs'],
              wm['Wqkv'], wm['bqkv'],
              wm['R'], wm['D'], wm['A'],
              wm['PWo'], wm['bo']]
    flops_per_edge = 2 * (64 * 128 * 2 + 128 * 128 + 64 * 768
                          + 256 * 16 + 16 * 16 + 16 * 256 + 256 * 64)
    cost = pl.CostEstimate(
        flops=e * flops_per_edge,
        transcendentals=e * (EDGE_HIDDEN + 2 * NUM_PAIRS),
        bytes_accessed=e * (2 * ATOM_HIDDEN * 2 + EDGE_HIDDEN * 2 + ATOM_HIDDEN * 4)
                       + 300_000)
    return pl.pallas_call(
        _edge_message_kernel,
        out_shape=jax.ShapeDtypeStruct((e, ATOM_HIDDEN), jnp.float32),
        grid=(e // tile_e,),
        in_specs=[pl.BlockSpec((tile_e, ATOM_HIDDEN), lambda i: (i, 0)),
                  pl.BlockSpec((tile_e, ATOM_HIDDEN), lambda i: (i, 0)),
                  pl.BlockSpec((tile_e, EDGE_HIDDEN), lambda i: (i, 0))]
                 + [_full_spec(c) for c in consts],
        out_specs=pl.BlockSpec((tile_e, ATOM_HIDDEN), lambda i: (i, 0)),
        compiler_params=_cparams(),
        cost_estimate=cost,
    )(x_i, x_j, edge_attr, *consts)


# -------------------- trace-time weight precomposition ------------------------

def _prepare_message_weights(params):
    bf16 = jnp.bfloat16
    H, HD, NH, NP, PW = ATOM_HIDDEN, HEAD_DIM, NUM_HEADS, NUM_PAIRS, PAIR_WIDTH

    # fused lin_f || lin_s, split by the three blocks of z = [x_i, x_j, edge_attr]
    wf, bfv = params['lin_f_w'], params['lin_f_b']
    ws, bsv = params['lin_s_w'], params['lin_s_b']
    Wfi = jnp.concatenate([wf[0:H], ws[0:H]], axis=1)                 # (64, 128)
    Wfj = jnp.concatenate([wf[H:2 * H], ws[H:2 * H]], axis=1)         # (64, 128)
    Wfe = jnp.concatenate([wf[2 * H:], ws[2 * H:]], axis=1)           # (128, 128)
    bfs = jnp.concatenate([bfv, bsv], axis=1)                         # (1, 128)

    # q/k/v columns per torch `qkv.view(-1, heads, 3*head_dim).chunk(3, dim=-1)` layout:
    # head h -> q cols [48h, 48h+16), k next 16, v next 16; repacked head-major.
    cols = (np.arange(NH)[:, None] * (3 * HD) + np.arange(HD)[None, :]).reshape(-1)
    scale = HD ** -0.5
    Wq = params['qkv_w'][:, cols] * scale
    bq = params['qkv_b'][:, cols] * scale
    Wk = params['qkv_w'][:, cols + HD]
    bk = params['qkv_b'][:, cols + HD]
    Wv = params['qkv_w'][:, cols + 2 * HD]
    bv = params['qkv_b'][:, cols + 2 * HD]

    # static 0/1 selector matrices (head-pair expansion / reduction), built at trace time
    EQ = np.zeros((H, PW), np.float32)   # query head i -> all (i, j) pair slots
    EK = np.zeros((H, PW), np.float32)   # key/value head j -> all (i, j) pair slots
    R = np.zeros((PW, NP), np.float32)   # sum over d within each pair slot
    A = np.zeros((NP, PW), np.float32)   # broadcast attn weight over its 16 lanes
    P = np.zeros((PW, H), np.float32)    # sum over j, producing head-major (i, d) output
    D = np.zeros((NP, NP), np.float32)   # per-query-head softmax denominator (block diag)
    for i in range(NH):
        D[i * NH:(i + 1) * NH, i * NH:(i + 1) * NH] = 1.0
        for j in range(NH):
            p_idx = i * NH + j
            for d in range(HD):
                lane = p_idx * HD + d
                EQ[i * HD + d, lane] = 1.0
                EK[j * HD + d, lane] = 1.0
                R[lane, p_idx] = 1.0
                A[p_idx, lane] = 1.0
                P[lane, i * HD + d] = 1.0

    Wqkv = jnp.concatenate([Wq @ EQ, Wk @ EK, Wv @ EK], axis=1)       # (64, 768)
    bqkv = jnp.concatenate([bq @ EQ, bk @ EK, bv @ EK], axis=1)       # (1, 768)

    # precompose P @ out_proj (exact: P is 0/1), cast to bf16 after composing
    PWo = jnp.asarray(P) @ params['aout_w']                           # (256, 64)

    return dict(
        Wfi=Wfi.astype(bf16), Wfj=Wfj.astype(bf16), Wfe=Wfe.astype(bf16), bfs=bfs,
        Wqkv=Wqkv.astype(bf16), bqkv=bqkv,
        R=jnp.asarray(R), D=jnp.asarray(D), A=jnp.asarray(A),
        PWo=PWo.astype(bf16), bo=params['aout_b'],
        l1_w=jnp.stack([w for w, _ in params['l1']]).astype(bf16),    # (4, 64, 64)
        l1_b=jnp.stack([b for _, b in params['l1']]),                 # (4, 1, 64)
    )


# ------------------------------ parameters ------------------------------------

def _linear_params(key, fan_in, fan_out):
    kw, kb = jax.random.split(key)
    bound = 1.0 / math.sqrt(fan_in)
    w = jax.random.uniform(kw, (fan_in, fan_out), jnp.float32, -bound, bound)
    b = jax.random.uniform(kb, (1, fan_out), jnp.float32, -bound, bound)
    return w, b


def init_params(key, num_features, edge_features):
    keys = iter(jax.random.split(key, 32))
    p = {}
    p['atom_w'], p['atom_b'] = _linear_params(next(keys), num_features, ATOM_HIDDEN)
    p['ln1_g'] = jnp.ones((1, ATOM_HIDDEN), jnp.float32)
    p['ln1_b'] = jnp.zeros((1, ATOM_HIDDEN), jnp.float32)
    p['edge_w'], p['edge_b'] = _linear_params(next(keys), edge_features, EDGE_HIDDEN)
    p['ln2_g'] = jnp.ones((1, EDGE_HIDDEN), jnp.float32)
    p['ln2_b'] = jnp.zeros((1, EDGE_HIDDEN), jnp.float32)

    zin = 2 * ATOM_HIDDEN + EDGE_HIDDEN                 # cat([x_i, x_j, edge_attr])
    p['lin_f_w'], p['lin_f_b'] = _linear_params(next(keys), zin, ATOM_HIDDEN)
    p['lin_s_w'], p['lin_s_b'] = _linear_params(next(keys), zin, ATOM_HIDDEN)
    p['qkv_w'], p['qkv_b'] = _linear_params(next(keys), ATOM_HIDDEN, 3 * ATOM_HIDDEN)
    p['aout_w'], p['aout_b'] = _linear_params(next(keys), ATOM_HIDDEN, ATOM_HIDDEN)
    p['cg_ln_g'] = jnp.ones((1, ATOM_HIDDEN), jnp.float32)
    p['cg_ln_b'] = jnp.zeros((1, ATOM_HIDDEN), jnp.float32)

    p['l1'] = [_linear_params(next(keys), ATOM_HIDDEN, ATOM_HIDDEN) for _ in range(L1_NUM)]
    p['l2'] = [_linear_params(next(keys), ATOM_HIDDEN, ATOM_HIDDEN) for _ in range(L2_NUM)]
    p['out_w'], p['out_b'] = _linear_params(next(keys), ATOM_HIDDEN, 1)
    return p


# -------------------------------- forward -------------------------------------

def is_stable_gnn_forward(params, x, edge_index, edge_attr, batch, num_graphs):
    n_real = x.shape[0]
    e_real = edge_attr.shape[0]
    tile_n, n_pad = _row_tiling(n_real, MAX_NODE_TILE)
    tile_e, e_pad = _row_tiling(e_real, MAX_EDGE_TILE)

    xp = _pad_rows(x, n_pad)
    eap = _pad_rows(edge_attr, e_pad)

    # encoders: LayerNorm(Linear(.)), row-tiled
    h = linear_layernorm(xp, params['atom_w'], params['atom_b'],
                         params['ln1_g'], params['ln1_b'], tile_n)
    ea = linear_layernorm(eap, params['edge_w'], params['edge_b'],
                          params['ln2_g'], params['ln2_b'], tile_e)
    ea_b = ea.astype(jnp.bfloat16)     # edge kernel consumes bf16 (cast once, reused 4x)

    src, dst = edge_index[0], edge_index[1]          # PyG: x_j = x[src], x_i = x[dst]
    pad_e = e_pad - e_real
    if pad_e:
        zeros_e = jnp.zeros((pad_e,), dst.dtype)
        src_g = jnp.concatenate([src, zeros_e])                           # in-bounds gather
        dst_g = jnp.concatenate([dst, zeros_e])
        # padded edges scatter into an explicit EXTRA segment (id == n_pad), sliced off below
        dst_s = jnp.concatenate([dst, jnp.full((pad_e,), n_pad, dst.dtype)])
    else:
        src_g, dst_g, dst_s = src, dst, dst

    wm = _prepare_message_weights(params)

    # 4 applications of the SAME CGConvWithAttention module (shared weights)
    for layer in range(LAYER_NUMS):
        # TODO(synk): gather kept in XLA glue; in-kernel VMEM-resident-h gather not adopted
        # (dynamic gather lowering risk).  Gather traffic halved by using a bf16 copy of h.
        h_b = h.astype(jnp.bfloat16)
        x_i = jnp.take(h_b, dst_g, axis=0)
        x_j = jnp.take(h_b, src_g, axis=0)
        msg = edge_messages(x_i, x_j, ea_b, wm, tile_e)
        # aggr='add' scatter; padded edges land in segment n_pad which is dropped by the slice
        agg = jax.ops.segment_sum(msg, dst_s, num_segments=n_pad + 1)[:n_pad]
        if layer < LAYER_NUMS - 1:
            h = ln_residual(agg, h, params['cg_ln_g'], params['cg_ln_b'], tile_n)
        else:
            # last layer: fuse the l1 gelu-MLP stack into the LN+residual epilogue
            h = ln_residual_mlp(agg, h, params['cg_ln_g'], params['cg_ln_b'],
                                wm['l1_w'], wm['l1_b'], tile_n)

    # global_mean_pool over the real nodes (data-dependent segment reduce -> JAX glue)
    h = h[:n_real]
    counts = jax.ops.segment_sum(jnp.ones((n_real,), jnp.float32), batch,
                                 num_segments=num_graphs)
    pooled = jax.ops.segment_sum(h, batch, num_segments=num_graphs) \
        / jnp.maximum(counts, 1.0)[:, None]

    # l2 stack + final head: only num_graphs rows -> plain jnp (launch overhead dominated)
    g = pooled
    for w, b in params['l2']:
        g = _gelu(g @ w + b)
    out = g @ params['out_w'] + params['out_b']
    return out.reshape(-1)


# ----------------------------------- main --------------------------------------

if __name__ == "__main__":
    NUM_FEATURES = 16
    EDGE_FEATURES = 8
    N_NODES = 14          # exercises the node-padding path
    N_EDGES = 37          # exercises the edge-padding / extra-segment-scatter path
    N_GRAPHS = 2

    key = jax.random.PRNGKey(0)
    kx, ke, ksrc, kdst, kp = jax.random.split(key, 5)

    x = jax.random.normal(kx, (N_NODES, NUM_FEATURES), jnp.float32)
    edge_attr = jax.random.normal(ke, (N_EDGES, EDGE_FEATURES), jnp.float32)
    src = jax.random.randint(ksrc, (N_EDGES,), 0, N_NODES, dtype=jnp.int32)
    dst = jax.random.randint(kdst, (N_EDGES,), 0, N_NODES, dtype=jnp.int32)
    edge_index = jnp.stack([src, dst])                   # (2, E)
    batch = jnp.concatenate([jnp.zeros(N_NODES // 2, jnp.int32),
                             jnp.ones(N_NODES - N_NODES // 2, jnp.int32)])

    params = init_params(kp, NUM_FEATURES, EDGE_FEATURES)

    fwd = jax.jit(is_stable_gnn_forward, static_argnums=(5,))
    out = jax.block_until_ready(fwd(params, x, edge_index, edge_attr, batch, N_GRAPHS))
    assert out.shape == (N_GRAPHS,), out.shape
    assert bool(jnp.all(jnp.isfinite(out)))
    print("KERNEL_OK")
</pallas_src>

<mosaic_0001>
module attributes {stable_mosaic.version = 11 : i64} {
  func.func @_linear_ln_kernel(%arg0: i32, %arg1: memref<16x16xf32, #tpu.memory_space<vmem>>, %arg2: memref<16x64xbf16, #tpu.memory_space<vmem>>, %arg3: memref<1x64xf32, #tpu.memory_space<vmem>>, %arg4: memref<1x64xf32, #tpu.memory_space<vmem>>, %arg5: memref<1x64xf32, #tpu.memory_space<vmem>>, %arg6: memref<16x64xf32, #tpu.memory_space<vmem>>) attributes {dimension_semantics = [#tpu.dimension_semantics<parallel>], iteration_bounds = array<i64: 2>, scalar_prefetch = 0 : i64, scratch_operands = 0 : i64, tpu.core_type = #tpu.core_type<tc>, window_params = [{transform_indices = @transform_0, window_bounds = array<i64: 16, 16>}, {pipeline_mode = #tpu.pipeline_mode<synchronous>, transform_indices = @transform_1, window_bounds = array<i64: 16, 64>}, {pipeline_mode = #tpu.pipeline_mode<synchronous>, transform_indices = @transform_2, window_bounds = array<i64: 1, 64>}, {pipeline_mode = #tpu.pipeline_mode<synchronous>, transform_indices = @transform_3, window_bounds = array<i64: 1, 64>}, {pipeline_mode = #tpu.pipeline_mode<synchronous>, transform_indices = @transform_4, window_bounds = array<i64: 1, 64>}, {transform_indices = @transform_5, window_bounds = array<i64: 16, 64>}]} {
    %c0 = arith.constant 0 : index
    %c0_0 = arith.constant 0 : index
    %0 = vector.load %arg1[%c0, %c0_0] : memref<16x16xf32, #tpu.memory_space<vmem>>, vector<16x16xf32>
    %1 = arith.truncf %0 : vector<16x16xf32> to vector<16x16xbf16>
    %c0_1 = arith.constant 0 : index
    %c0_2 = arith.constant 0 : index
    %2 = vector.load %arg2[%c0_1, %c0_2] : memref<16x64xbf16, #tpu.memory_space<vmem>>, vector<16x64xbf16>
    %cst = arith.constant dense<0.000000e+00> : vector<16x64xf32>
    %3 = tpu.matmul %1, %2, %cst {dimension_numbers = #tpu.dot_dimension_numbers<[1], [0], [0], [1], [0, 0, 1, 1], [], []>} : vector<16x16xbf16>, vector<16x64xbf16>, vector<16x64xf32> -> vector<16x64xf32>
    %c0_3 = arith.constant 0 : index
    %c0_4 = arith.constant 0 : index
    %4 = vector.load %arg3[%c0_3, %c0_4] : memref<1x64xf32, #tpu.memory_space<vmem>>, vector<1x64xf32>
    %5 = vector.broadcast %4 : vector<1x64xf32> to vector<16x64xf32>
    %6 = arith.addf %3, %5 : vector<16x64xf32>
    %cst_5 = arith.constant dense<0.000000e+00> : vector<16xf32>
    %7 = vector.multi_reduction <add>, %6, %cst_5 [1] : vector<16x64xf32> to vector<16xf32>
    %8 = vector.shape_cast %7 : vector<16xf32> to vector<16x1xf32>
    %cst_6 = arith.constant 6.400000e+01 : f32
    %9 = vector.broadcast %cst_6 : f32 to vector<16x1xf32>
    %10 = arith.divf %8, %9 : vector<16x1xf32>
    %11 = vector.broadcast %10 : vector<16x1xf32> to vector<16x64xf32>
    %12 = arith.subf %6, %11 : vector<16x64xf32>
    %13 = arith.mulf %12, %12 : vector<16x64xf32>
    %cst_7 = arith.constant dense<0.000000e+00> : vector<16xf32>
    %14 = vector.multi_reduction <add>, %13, %cst_7 [1] : vector<16x64xf32> to vector<16xf32>
    %15 = vector.shape_cast %14 : vector<16xf32> to vector<16x1xf32>
    %cst_8 = arith.constant 6.400000e+01 : f32
    %16 = vector.broadcast %cst_8 : f32 to vector<16x1xf32>
    %17 = arith.divf %15, %16 : vector<16x1xf32>
    %18 = vector.broadcast %10 : vector<16x1xf32> to vector<16x64xf32>
    %19 = arith.subf %6, %18 : vector<16x64xf32>
    %cst_9 = arith.constant 9.99999974E-6 : f32
    %20 = vector.broadcast %cst_9 : f32 to vector<16x1xf32>
    %21 = arith.addf %17, %20 : vector<16x1xf32>
    %22 = math.rsqrt %21 : vector<16x1xf32>
    %23 = vector.broadcast %22 : vector<16x1xf32> to vector<16x64xf32>
    %24 = arith.mulf %19, %23 : vector<16x64xf32>
    %c0_10 = arith.constant 0 : index
    %c0_11 = arith.constant 0 : index
    %25 = vector.load %arg4[%c0_10, %c0_11] : memref<1x64xf32, #tpu.memory_space<vmem>>, vector<1x64xf32>
    %26 = vector.broadcast %25 : vector<1x64xf32> to vector<16x64xf32>
    %27 = arith.mulf %24, %26 : vector<16x64xf32>
    %c0_12 = arith.constant 0 : index
    %c0_13 = arith.constant 0 : index
    %28 = vector.load %arg5[%c0_12, %c0_13] : memref<1x64xf32, #tpu.memory_space<vmem>>, vector<1x64xf32>
    %29 = vector.broadcast %28 : vector<1x64xf32> to vector<16x64xf32>
    %30 = arith.addf %27, %29 : vector<16x64xf32>
    %c0_14 = arith.constant 0 : index
    %c0_15 = arith.constant 0 : index
    %31 = vector.load %arg6[%c0_14, %c0_15] : memref<16x64xf32, #tpu.memory_space<vmem>>, vector<16x64xf32>
    tpu.vector_store %arg6[%c0_14, %c0_15], %30 {strides = array<i32>} : memref<16x64xf32, #tpu.memory_space<vmem>>, vector<16x64xf32>,
    return
  }
  func.func @transform_0(%arg0: i32) -> (i32, i32) {
    %c0_i32 = arith.constant 0 : i32
    %c0_i32_0 = arith.constant 0 : i32
    return %arg0, %c0_i32 : i32, i32
  }
  func.func @transform_1(%arg0: i32) -> (i32, i32) {
    %c0_i32 = arith.constant 0 : i32
    %c0_i32_0 = arith.constant 0 : i32
    %c0_i32_1 = arith.constant 0 : i32
    return %c0_i32, %c0_i32_0 : i32, i32
  }
  func.func @transform_2(%arg0: i32) -> (i32, i32) {
    %c0_i32 = arith.constant 0 : i32
    %c0_i32_0 = arith.constant 0 : i32
    %c0_i32_1 = arith.constant 0 : i32
    return %c0_i32, %c0_i32_0 : i32, i32
  }
  func.func @transform_3(%arg0: i32) -> (i32, i32) {
    %c0_i32 = arith.constant 0 : i32
    %c0_i32_0 = arith.constant 0 : i32
    %c0_i32_1 = arith.constant 0 : i32
    return %c0_i32, %c0_i32_0 : i32, i32
  }
  func.func @transform_4(%arg0: i32) -> (i32, i32) {
    %c0_i32 = arith.constant 0 : i32
    %c0_i32_0 = arith.constant 0 : i32
    %c0_i32_1 = arith.constant 0 : i32
    return %c0_i32, %c0_i32_0 : i32, i32
  }
  func.func @transform_5(%arg0: i32) -> (i32, i32) {
    %c0_i32 = arith.constant 0 : i32
    %c0_i32_0 = arith.constant 0 : i32
    return %arg0, %c0_i32 : i32, i32
  }
}

module attributes {stable_mosaic.version = 11 : i64} {
  func.func @_linear_ln_kernel(%arg0: i32, %arg1: memref<32x8xf32, #tpu.memory_space<vmem>>, %arg2: memref<8x128xbf16, #tpu.memory_space<vmem>>, %arg3: memref<1x128xf32, #tpu.memory_space<vmem>>, %arg4: memref<1x128xf32, #tpu.memory_space<vmem>>, %arg5: memref<1x128xf32, #tpu.memory_space<vmem>>, %arg6: memref<32x128xf32, #tpu.memory_space<vmem>>) attributes {dimension_semantics = [#tpu.dimension_semantics<parallel>], iteration_bounds = array<i64: 2>, scalar_prefetch = 0 : i64, scratch_operands = 0 : i64, tpu.core_type = #tpu.core_type<tc>, window_params = [{transform_indices = @transform_0, window_bounds = array<i64: 32, 8>}, {pipeline_mode = #tpu.pipeline_mode<synchronous>, transform_indices = @transform_1, window_bounds = array<i64: 8, 128>}, {pipeline_mode = #tpu.pipeline_mode<synchronous>, transform_indices = @transform_2, window_bounds = array<i64: 1, 128>}, {pipeline_mode = #tpu.pipeline_mode<synchronous>, transform_indices = @transform_3, window_bounds = array<i64: 1, 128>}, {pipeline_mode = #tpu.pipeline_mode<synchronous>, transform_indices = @transform_4, window_bounds = array<i64: 1, 128>}, {transform_indices = @transform_5, window_bounds = array<i64: 32, 128>}]} {
    %c0 = arith.constant 0 : index
    %c0_0 = arith.constant 0 : index
    %0 = vector.load %arg1[%c0, %c0_0] : memref<32x8xf32, #tpu.memory_space<vmem>>, vector<32x8xf32>
    %1 = arith.truncf %0 : vector<32x8xf32> to vector<32x8xbf16>
    %c0_1 = arith.constant 0 : index
    %c0_2 = arith.constant 0 : index
    %2 = vector.load %arg2[%c0_1, %c0_2] : memref<8x128xbf16, #tpu.memory_space<vmem>>, vector<8x128xbf16>
    %cst = arith.constant dense<0.000000e+00> : vector<32x128xf32>
    %3 = tpu.matmul %1, %2, %cst {dimension_numbers = #tpu.dot_dimension_numbers<[1], [0], [0], [1], [0, 0, 1, 1], [], []>} : vector<32x8xbf16>, vector<8x128xbf16>, vector<32x128xf32> -> vector<32x128xf32>
    %c0_3 = arith.constant 0 : index
    %c0_4 = arith.constant 0 : index
    %4 = vector.load %arg3[%c0_3, %c0_4] : memref<1x128xf32, #tpu.memory_space<vmem>>, vector<1x128xf32>
    %5 = vector.broadcast %4 : vector<1x128xf32> to vector<32x128xf32>
    %6 = arith.addf %3, %5 : vector<32x128xf32>
    %cst_5 = arith.constant dense<0.000000e+00> : vector<32xf32>
    %7 = vector.multi_reduction <add>, %6, %cst_5 [1] : vector<32x128xf32> to vector<32xf32>
    %8 = vector.shape_cast %7 : vector<32xf32> to vector<32x1xf32>
    %cst_6 = arith.constant 1.280000e+02 : f32
    %9 = vector.broadcast %cst_6 : f32 to vector<32x1xf32>
    %10 = arith.divf %8, %9 : vector<32x1xf32>
    %11 = vector.broadcast %10 : vector<32x1xf32> to vector<32x128xf32>
    %12 = arith.subf %6, %11 : vector<32x128xf32>
    %13 = arith.mulf %12, %12 : vector<32x128xf32>
    %cst_7 = arith.constant dense<0.000000e+00> : vector<32xf32>
    %14 = vector.multi_reduction <add>, %13, %cst_7 [1] : vector<32x128xf32> to vector<32xf32>
    %15 = vector.shape_cast %14 : vector<32xf32> to vector<32x1xf32>
    %cst_8 = arith.constant 1.280000e+02 : f32
    %16 = vector.broadcast %cst_8 : f32 to vector<32x1xf32>
    %17 = arith.divf %15, %16 : vector<32x1xf32>
    %18 = vector.broadcast %10 : vector<32x1xf32> to vector<32x128xf32>
    %19 = arith.subf %6, %18 : vector<32x128xf32>
    %cst_9 = arith.constant 9.99999974E-6 : f32
    %20 = vector.broadcast %cst_9 : f32 to vector<32x1xf32>
    %21 = arith.addf %17, %20 : vector<32x1xf32>
    %22 = math.rsqrt %21 : vector<32x1xf32>
    %23 = vector.broadcast %22 : vector<32x1xf32> to vector<32x128xf32>
    %24 = arith.mulf %19, %23 : vector<32x128xf32>
    %c0_10 = arith.constant 0 : index
    %c0_11 = arith.constant 0 : index
    %25 = vector.load %arg4[%c0_10, %c0_11] : memref<1x128xf32, #tpu.memory_space<vmem>>, vector<1x128xf32>
    %26 = vector.broadcast %25 : vector<1x128xf32> to vector<32x128xf32>
    %27 = arith.mulf %24, %26 : vector<32x128xf32>
    %c0_12 = arith.constant 0 : index
    %c0_13 = arith.constant 0 : index
    %28 = vector.load %arg5[%c0_12, %c0_13] : memref<1x128xf32, #tpu.memory_space<vmem>>, vector<1x128xf32>
    %29 = vector.broadcast %28 : vector<1x128xf32> to vector<32x128xf32>
    %30 = arith.addf %27, %29 : vector<32x128xf32>
    %c0_14 = arith.constant 0 : index
    %c0_15 = arith.constant 0 : index
    %31 = vector.load %arg6[%c0_14, %c0_15] : memref<32x128xf32, #tpu.memory_space<vmem>>, vector<32x128xf32>
    tpu.vector_store %arg6[%c0_14, %c0_15], %30 {strides = array<i32>} : memref<32x128xf32, #tpu.memory_space<vmem>>, vector<32x128xf32>,
    return
  }
  func.func @transform_0(%arg0: i32) -> (i32, i32) {
    %c0_i32 = arith.constant 0 : i32
    %c0_i32_0 = arith.constant 0 : i32
    return %arg0, %c0_i32 : i32, i32
  }
  func.func @transform_1(%arg0: i32) -> (i32, i32) {
    %c0_i32 = arith.constant 0 : i32
    %c0_i32_0 = arith.constant 0 : i32
    %c0_i32_1 = arith.constant 0 : i32
    return %c0_i32, %c0_i32_0 : i32, i32
  }
  func.func @transform_2(%arg0: i32) -> (i32, i32) {
    %c0_i32 = arith.constant 0 : i32
    %c0_i32_0 = arith.constant 0 : i32
    %c0_i32_1 = arith.constant 0 : i32
    return %c0_i32, %c0_i32_0 : i32, i32
  }
  func.func @transform_3(%arg0: i32) -> (i32, i32) {
    %c0_i32 = arith.constant 0 : i32
    %c0_i32_0 = arith.constant 0 : i32
    %c0_i32_1 = arith.constant 0 : i32
    return %c0_i32, %c0_i32_0 : i32, i32
  }
  func.func @transform_4(%arg0: i32) -> (i32, i32) {
    %c0_i32 = arith.constant 0 : i32
    %c0_i32_0 = arith.constant 0 : i32
    %c0_i32_1 = arith.constant 0 : i32
    return %c0_i32, %c0_i32_0 : i32, i32
  }
  func.func @transform_5(%arg0: i32) -> (i32, i32) {
    %c0_i32 = arith.constant 0 : i32
    %c0_i32_0 = arith.constant 0 : i32
    return %arg0, %c0_i32 : i32, i32
  }
}

module attributes {stable_mosaic.version = 11 : i64} {
  func.func @_edge_message_kernel(%arg0: i32, %arg1: memref<32x64xbf16, #tpu.memory_space<vmem>>, %arg2: memref<32x64xbf16, #tpu.memory_space<vmem>>, %arg3: memref<32x128xbf16, #tpu.memory_space<vmem>>, %arg4: memref<64x128xbf16, #tpu.memory_space<vmem>>, %arg5: memref<64x128xbf16, #tpu.memory_space<vmem>>, %arg6: memref<128x128xbf16, #tpu.memory_space<vmem>>, %arg7: memref<1x128xf32, #tpu.memory_space<vmem>>, %arg8: memref<64x768xbf16, #tpu.memory_space<vmem>>, %arg9: memref<1x768xf32, #tpu.memory_space<vmem>>, %arg10: memref<256x16xf32, #tpu.memory_space<vmem>>, %arg11: memref<16x16xf32, #tpu.memory_space<vmem>>, %arg12: memref<16x256xf32, #tpu.memory_space<vmem>>, %arg13: memref<256x64xbf16, #tpu.memory_space<vmem>>, %arg14: memref<1x64xf32, #tpu.memory_space<vmem>>, %arg15: memref<32x64xf32, #tpu.memory_space<vmem>>) attributes {dimension_semantics = [#tpu.dimension_semantics<parallel>], iteration_bounds = array<i64: 2>, scalar_prefetch = 0 : i64, scratch_operands = 0 : i64, tpu.core_type = #tpu.core_type<tc>, window_params = [{transform_indices = @transform_0, window_bounds = array<i64: 32, 64>}, {transform_indices = @transform_1, window_bounds = array<i64: 32, 64>}, {transform_indices = @transform_2, window_bounds = array<i64: 32, 128>}, {pipeline_mode = #tpu.pipeline_mode<synchronous>, transform_indices = @transform_3, window_bounds = array<i64: 64, 128>}, {pipeline_mode = #tpu.pipeline_mode<synchronous>, transform_indices = @transform_4, window_bounds = array<i64: 64, 128>}, {pipeline_mode = #tpu.pipeline_mode<synchronous>, transform_indices = @transform_5, window_bounds = array<i64: 128, 128>}, {pipeline_mode = #tpu.pipeline_mode<synchronous>, transform_indices = @transform_6, window_bounds = array<i64: 1, 128>}, {pipeline_mode = #tpu.pipeline_mode<synchronous>, transform_indices = @transform_7, window_bounds = array<i64: 64, 768>}, {pipeline_mode = #tpu.pipeline_mode<synchronous>, transform_indices = @transform_8, window_bounds = array<i64: 1, 768>}, {pipeline_mode = #tpu.pipeline_mode<synchronous>, transform_indices = @transform_9, window_bounds = array<i64: 256, 16>}, {pipeline_mode = #tpu.pipeline_mode<synchronous>, transform_indices = @transform_10, window_bounds = array<i64: 16, 16>}, {pipeline_mode = #tpu.pipeline_mode<synchronous>, transform_indices = @transform_11, window_bounds = array<i64: 16, 256>}, {pipeline_mode = #tpu.pipeline_mode<synchronous>, transform_indices = @transform_12, window_bounds = array<i64: 256, 64>}, {pipeline_mode = #tpu.pipeline_mode<synchronous>, transform_indices = @transform_13, window_bounds = array<i64: 1, 64>}, {transform_indices = @transform_14, window_bounds = array<i64: 32, 64>}]} {
    %c0 = arith.constant 0 : index
    %c0_0 = arith.constant 0 : index
    %0 = vector.load %arg1[%c0, %c0_0] : memref<32x64xbf16, #tpu.memory_space<vmem>>, vector<32x64xbf16>
    %c0_1 = arith.constant 0 : index
    %c0_2 = arith.constant 0 : index
    %1 = vector.load %arg4[%c0_1, %c0_2] : memref<64x128xbf16, #tpu.memory_space<vmem>>, vector<64x128xbf16>
    %cst = arith.constant dense<0.000000e+00> : vector<32x128xf32>
    %2 = tpu.matmul %0, %1, %cst {dimension_numbers = #tpu.dot_dimension_numbers<[1], [0], [0], [1], [0, 0, 1, 1], [], []>} : vector<32x64xbf16>, vector<64x128xbf16>, vector<32x128xf32> -> vector<32x128xf32>
    %c0_3 = arith.constant 0 : index
    %c0_4 = arith.constant 0 : index
    %3 = vector.load %arg2[%c0_3, %c0_4] : memref<32x64xbf16, #tpu.memory_space<vmem>>, vector<32x64xbf16>
    %c0_5 = arith.constant 0 : index
    %c0_6 = arith.constant 0 : index
    %4 = vector.load %arg5[%c0_5, %c0_6] : memref<64x128xbf16, #tpu.memory_space<vmem>>, vector<64x128xbf16>
    %cst_7 = arith.constant dense<0.000000e+00> : vector<32x128xf32>
    %5 = tpu.matmul %3, %4, %cst_7 {dimension_numbers = #tpu.dot_dimension_numbers<[1], [0], [0], [1], [0, 0, 1, 1], [], []>} : vector<32x64xbf16>, vector<64x128xbf16>, vector<32x128xf32> -> vector<32x128xf32>
    %6 = arith.addf %2, %5 : vector<32x128xf32>
    %c0_8 = arith.constant 0 : index
    %c0_9 = arith.constant 0 : index
    %7 = vector.load %arg3[%c0_8, %c0_9] : memref<32x128xbf16, #tpu.memory_space<vmem>>, vector<32x128xbf16>
    %c0_10 = arith.constant 0 : index
    %c0_11 = arith.constant 0 : index
    %8 = vector.load %arg6[%c0_10, %c0_11] : memref<128x128xbf16, #tpu.memory_space<vmem>>, vector<128x128xbf16>
    %cst_12 = arith.constant dense<0.000000e+00> : vector<32x128xf32>
    %9 = tpu.matmul %7, %8, %cst_12 {dimension_numbers = #tpu.dot_dimension_numbers<[1], [0], [0], [1], [0, 0, 1, 1], [], []>} : vector<32x128xbf16>, vector<128x128xbf16>, vector<32x128xf32> -> vector<32x128xf32>
    %10 = arith.addf %6, %9 : vector<32x128xf32>
    %c0_13 = arith.constant 0 : index
    %c0_14 = arith.constant 0 : index
    %11 = vector.load %arg7[%c0_13, %c0_14] : memref<1x128xf32, #tpu.memory_space<vmem>>, vector<1x128xf32>
    %12 = vector.broadcast %11 : vector<1x128xf32> to vector<32x128xf32>
    %13 = arith.addf %10, %12 : vector<32x128xf32>
    %cst_15 = arith.constant 5.000000e-01 : f32
    %14 = vector.broadcast %cst_15 : f32 to vector<32x128xf32>
    %15 = arith.mulf %14, %13 : vector<32x128xf32>
    %cst_16 = arith.constant 0.707106769 : f32
    %16 = vector.broadcast %cst_16 : f32 to vector<32x128xf32>
    %17 = arith.mulf %13, %16 : vector<32x128xf32>
    %18 = math.erf %17 : vector<32x128xf32>
    %cst_17 = arith.constant 1.000000e+00 : f32
    %19 = vector.broadcast %cst_17 : f32 to vector<32x128xf32>
    %20 = arith.addf %19, %18 : vector<32x128xf32>
    %21 = arith.mulf %15, %20 : vector<32x128xf32>
    %22 = vector.extract_strided_slice %21 {offsets = [0, 0], sizes = [32, 64], strides = [1, 1]} : vector<32x128xf32> to vector<32x64xf32>
    %23 = vector.extract_strided_slice %21 {offsets = [0, 64], sizes = [32, 64], strides = [1, 1]} : vector<32x128xf32> to vector<32x64xf32>
    %24 = arith.mulf %22, %23 : vector<32x64xf32>
    %25 = arith.truncf %24 : vector<32x64xf32> to vector<32x64xbf16>
    %c0_18 = arith.constant 0 : index
    %c0_19 = arith.constant 0 : index
    %26 = vector.load %arg8[%c0_18, %c0_19] : memref<64x768xbf16, #tpu.memory_space<vmem>>, vector<64x768xbf16>
    %cst_20 = arith.constant dense<0.000000e+00> : vector<32x768xf32>
    %27 = tpu.matmul %25, %26, %cst_20 {dimension_numbers = #tpu.dot_dimension_numbers<[1], [0], [0], [1], [0, 0, 1, 1], [], []>} : vector<32x64xbf16>, vector<64x768xbf16>, vector<32x768xf32> -> vector<32x768xf32>
    %c0_21 = arith.constant 0 : index
    %c0_22 = arith.constant 0 : index
    %28 = vector.load %arg9[%c0_21, %c0_22] : memref<1x768xf32, #tpu.memory_space<vmem>>, vector<1x768xf32>
    %29 = vector.broadcast %28 : vector<1x768xf32> to vector<32x768xf32>
    %30 = arith.addf %27, %29 : vector<32x768xf32>
    %31 = vector.extract_strided_slice %30 {offsets = [0, 0], sizes = [32, 256], strides = [1, 1]} : vector<32x768xf32> to vector<32x256xf32>
    %32 = vector.extract_strided_slice %30 {offsets = [0, 256], sizes = [32, 256], strides = [1, 1]} : vector<32x768xf32> to vector<32x256xf32>
    %33 = vector.extract_strided_slice %30 {offsets = [0, 512], sizes = [32, 256], strides = [1, 1]} : vector<32x768xf32> to vector<32x256xf32>
    %34 = arith.mulf %31, %32 : vector<32x256xf32>
    %c0_23 = arith.constant 0 : index
    %c0_24 = arith.constant 0 : index
    %35 = vector.load %arg10[%c0_23, %c0_24] : memref<256x16xf32, #tpu.memory_space<vmem>>, vector<256x16xf32>
    %cst_25 = arith.constant dense<0.000000e+00> : vector<32x16xf32>
    %36 = tpu.matmul %34, %35, %cst_25 {dimension_numbers = #tpu.dot_dimension_numbers<[1], [0], [0], [1], [0, 0, 1, 1], [], []>} : vector<32x256xf32>, vector<256x16xf32>, vector<32x16xf32> -> vector<32x16xf32>
    %cst_26 = arith.constant dense<0xFF800000> : vector<32xf32>
    %37 = vector.multi_reduction <maximumf>, %36, %cst_26 [1] : vector<32x16xf32> to vector<32xf32>
    %38 = vector.shape_cast %37 : vector<32xf32> to vector<32x1xf32>
    %39 = vector.broadcast %38 : vector<32x1xf32> to vector<32x16xf32>
    %40 = arith.subf %36, %39 : vector<32x16xf32>
    %41 = math.exp %40 : vector<32x16xf32>
    %c0_27 = arith.constant 0 : index
    %c0_28 = arith.constant 0 : index
    %42 = vector.load %arg11[%c0_27, %c0_28] : memref<16x16xf32, #tpu.memory_space<vmem>>, vector<16x16xf32>
    %cst_29 = arith.constant dense<0.000000e+00> : vector<32x16xf32>
    %43 = tpu.matmul %41, %42, %cst_29 {dimension_numbers = #tpu.dot_dimension_numbers<[1], [0], [0], [1], [0, 0, 1, 1], [], []>} : vector<32x16xf32>, vector<16x16xf32>, vector<32x16xf32> -> vector<32x16xf32>
    %44 = tpu.reciprocal %43 {approx = true} : vector<32x16xf32> -> vector<32x16xf32>
    %45 = arith.mulf %41, %44 : vector<32x16xf32>
    %c0_30 = arith.constant 0 : index
    %c0_31 = arith.constant 0 : index
    %46 = vector.load %arg12[%c0_30, %c0_31] : memref<16x256xf32, #tpu.memory_space<vmem>>, vector<16x256xf32>
    %cst_32 = arith.constant dense<0.000000e+00> : vector<32x256xf32>
    %47 = tpu.matmul %45, %46, %cst_32 {dimension_numbers = #tpu.dot_dimension_numbers<[1], [0], [0], [1], [0, 0, 1, 1], [], []>} : vector<32x16xf32>, vector<16x256xf32>, vector<32x256xf32> -> vector<32x256xf32>
    %48 = arith.mulf %47, %33 : vector<32x256xf32>
    %49 = arith.truncf %48 : vector<32x256xf32> to vector<32x256xbf16>
    %c0_33 = arith.constant 0 : index
    %c0_34 = arith.constant 0 : index
    %50 = vector.load %arg13[%c0_33, %c0_34] : memref<256x64xbf16, #tpu.memory_space<vmem>>, vector<256x64xbf16>
    %cst_35 = arith.constant dense<0.000000e+00> : vector<32x64xf32>
    %51 = tpu.matmul %49, %50, %cst_35 {dimension_numbers = #tpu.dot_dimension_numbers<[1], [0], [0], [1], [0, 0, 1, 1], [], []>} : vector<32x256xbf16>, vector<256x64xbf16>, vector<32x64xf32> -> vector<32x64xf32>
    %c0_36 = arith.constant 0 : index
    %c0_37 = arith.constant 0 : index
    %52 = vector.load %arg14[%c0_36, %c0_37] : memref<1x64xf32, #tpu.memory_space<vmem>>, vector<1x64xf32>
    %53 = vector.broadcast %52 : vector<1x64xf32> to vector<32x64xf32>
    %54 = arith.addf %51, %53 : vector<32x64xf32>
    %c0_38 = arith.constant 0 : index
    %c0_39 = arith.constant 0 : index
    %55 = vector.load %arg15[%c0_38, %c0_39] : memref<32x64xf32, #tpu.memory_space<vmem>>, vector<32x64xf32>
    tpu.vector_store %arg15[%c0_38, %c0_39], %54 {strides = array<i32>} : memref<32x64xf32, #tpu.memory_space<vmem>>, vector<32x64xf32>,
    return
  }
  func.func @transform_0(%arg0: i32) -> (i32, i32) {
    %c0_i32 = arith.constant 0 : i32
    %c0_i32_0 = arith.constant 0 : i32
    return %arg0, %c0_i32 : i32, i32
  }
  func.func @transform_1(%arg0: i32) -> (i32, i32) {
    %c0_i32 = arith.constant 0 : i32
    %c0_i32_0 = arith.constant 0 : i32
    return %arg0, %c0_i32 : i32, i32
  }
  func.func @transform_2(%arg0: i32) -> (i32, i32) {
    %c0_i32 = arith.constant 0 : i32
    %c0_i32_0 = arith.constant 0 : i32
    return %arg0, %c0_i32 : i32, i32
  }
  func.func @transform_3(%arg0: i32) -> (i32, i32) {
    %c0_i32 = arith.constant 0 : i32
    %c0_i32_0 = arith.constant 0 : i32
    %c0_i32_1 = arith.constant 0 : i32
    return %c0_i32, %c0_i32_0 : i32, i32
  }
  func.func @transform_4(%arg0: i32) -> (i32, i32) {
    %c0_i32 = arith.constant 0 : i32
    %c0_i32_0 = arith.constant 0 : i32
    %c0_i32_1 = arith.constant 0 : i32
    return %c0_i32, %c0_i32_0 : i32, i32
  }
  func.func @transform_5(%arg0: i32) -> (i32, i32) {
    %c0_i32 = arith.constant 0 : i32
    %c0_i32_0 = arith.constant 0 : i32
    %c0_i32_1 = arith.constant 0 : i32
    return %c0_i32, %c0_i32_0 : i32, i32
  }
  func.func @transform_6(%arg0: i32) -> (i32, i32) {
    %c0_i32 = arith.constant 0 : i32
    %c0_i32_0 = arith.constant 0 : i32
    %c0_i32_1 = arith.constant 0 : i32
    return %c0_i32, %c0_i32_0 : i32, i32
  }
  func.func @transform_7(%arg0: i32) -> (i32, i32) {
    %c0_i32 = arith.constant 0 : i32
    %c0_i32_0 = arith.constant 0 : i32
    %c0_i32_1 = arith.constant 0 : i32
    return %c0_i32, %c0_i32_0 : i32, i32
  }
  func.func @transform_8(%arg0: i32) -> (i32, i32) {
    %c0_i32 = arith.constant 0 : i32
    %c0_i32_0 = arith.constant 0 : i32
    %c0_i32_1 = arith.constant 0 : i32
    return %c0_i32, %c0_i32_0 : i32, i32
  }
  func.func @transform_9(%arg0: i32) -> (i32, i32) {
    %c0_i32 = arith.constant 0 : i32
    %c0_i32_0 = arith.constant 0 : i32
    %c0_i32_1 = arith.constant 0 : i32
    return %c0_i32, %c0_i32_0 : i32, i32
  }
  func.func @transform_10(%arg0: i32) -> (i32, i32) {
    %c0_i32 = arith.constant 0 : i32
    %c0_i32_0 = arith.constant 0 : i32
    %c0_i32_1 = arith.constant 0 : i32
    return %c0_i32, %c0_i32_0 : i32, i32
  }
  func.func @transform_11(%arg0: i32) -> (i32, i32) {
    %c0_i32 = arith.constant 0 : i32
    %c0_i32_0 = arith.constant 0 : i32
    %c0_i32_1 = arith.constant 0 : i32
    return %c0_i32, %c0_i32_0 : i32, i32
  }
  func.func @transform_12(%arg0: i32) -> (i32, i32) {
    %c0_i32 = arith.constant 0 : i32
    %c0_i32_0 = arith.constant 0 : i32
    %c0_i32_1 = arith.constant 0 : i32
    return %c0_i32, %c0_i32_0 : i32, i32
  }
  func.func @transform_13(%arg0: i32) -> (i32, i32) {
    %c0_i32 = arith.constant 0 : i32
    %c0_i32_0 = arith.constant 0 : i32
    %c0_i32_1 = arith.constant 0 : i32
    return %c0_i32, %c0_i32_0 : i32, i32
  }
  func.func @transform_14(%arg0: i32) -> (i32, i32) {
    %c0_i32 = arith.constant 0 : i32
    %c0_i32_0 = arith.constant 0 : i32
    return %arg0, %c0_i32 : i32, i32
  }
}

module attributes {stable_mosaic.version = 11 : i64} {
  func.func @_ln_residual_kernel(%arg0: i32, %arg1: memref<16x64xf32, #tpu.memory_space<vmem>>, %arg2: memref<16x64xf32, #tpu.memory_space<vmem>>, %arg3: memref<1x64xf32, #tpu.memory_space<vmem>>, %arg4: memref<1x64xf32, #tpu.memory_space<vmem>>, %arg5: memref<16x64xf32, #tpu.memory_space<vmem>>) attributes {dimension_semantics = [#tpu.dimension_semantics<parallel>], iteration_bounds = array<i64: 2>, scalar_prefetch = 0 : i64, scratch_operands = 0 : i64, tpu.core_type = #tpu.core_type<tc>, window_params = [{transform_indices = @transform_0, window_bounds = array<i64: 16, 64>}, {transform_indices = @transform_1, window_bounds = array<i64: 16, 64>}, {pipeline_mode = #tpu.pipeline_mode<synchronous>, transform_indices = @transform_2, window_bounds = array<i64: 1, 64>}, {pipeline_mode = #tpu.pipeline_mode<synchronous>, transform_indices = @transform_3, window_bounds = array<i64: 1, 64>}, {transform_indices = @transform_4, window_bounds = array<i64: 16, 64>}]} {
    %c0 = arith.constant 0 : index
    %c0_0 = arith.constant 0 : index
    %0 = vector.load %arg1[%c0, %c0_0] : memref<16x64xf32, #tpu.memory_space<vmem>>, vector<16x64xf32>
    %cst = arith.constant dense<0.000000e+00> : vector<16xf32>
    %1 = vector.multi_reduction <add>, %0, %cst [1] : vector<16x64xf32> to vector<16xf32>
    %2 = vector.shape_cast %1 : vector<16xf32> to vector<16x1xf32>
    %cst_1 = arith.constant 6.400000e+01 : f32
    %3 = vector.broadcast %cst_1 : f32 to vector<16x1xf32>
    %4 = arith.divf %2, %3 : vector<16x1xf32>
    %5 = vector.broadcast %4 : vector<16x1xf32> to vector<16x64xf32>
    %6 = arith.subf %0, %5 : vector<16x64xf32>
    %7 = arith.mulf %6, %6 : vector<16x64xf32>
    %cst_2 = arith.constant dense<0.000000e+00> : vector<16xf32>
    %8 = vector.multi_reduction <add>, %7, %cst_2 [1] : vector<16x64xf32> to vector<16xf32>
    %9 = vector.shape_cast %8 : vector<16xf32> to vector<16x1xf32>
    %cst_3 = arith.constant 6.400000e+01 : f32
    %10 = vector.broadcast %cst_3 : f32 to vector<16x1xf32>
    %11 = arith.divf %9, %10 : vector<16x1xf32>
    %12 = vector.broadcast %4 : vector<16x1xf32> to vector<16x64xf32>
    %13 = arith.subf %0, %12 : vector<16x64xf32>
    %cst_4 = arith.constant 9.99999974E-6 : f32
    %14 = vector.broadcast %cst_4 : f32 to vector<16x1xf32>
    %15 = arith.addf %11, %14 : vector<16x1xf32>
    %16 = math.rsqrt %15 : vector<16x1xf32>
    %17 = vector.broadcast %16 : vector<16x1xf32> to vector<16x64xf32>
    %18 = arith.mulf %13, %17 : vector<16x64xf32>
    %c0_5 = arith.constant 0 : index
    %c0_6 = arith.constant 0 : index
    %19 = vector.load %arg3[%c0_5, %c0_6] : memref<1x64xf32, #tpu.memory_space<vmem>>, vector<1x64xf32>
    %20 = vector.broadcast %19 : vector<1x64xf32> to vector<16x64xf32>
    %21 = arith.mulf %18, %20 : vector<16x64xf32>
    %c0_7 = arith.constant 0 : index
    %c0_8 = arith.constant 0 : index
    %22 = vector.load %arg4[%c0_7, %c0_8] : memref<1x64xf32, #tpu.memory_space<vmem>>, vector<1x64xf32>
    %23 = vector.broadcast %22 : vector<1x64xf32> to vector<16x64xf32>
    %24 = arith.addf %21, %23 : vector<16x64xf32>
    %c0_9 = arith.constant 0 : index
    %c0_10 = arith.constant 0 : index
    %25 = vector.load %arg2[%c0_9, %c0_10] : memref<16x64xf32, #tpu.memory_space<vmem>>, vector<16x64xf32>
    %26 = arith.addf %24, %25 : vector<16x64xf32>
    %c0_11 = arith.constant 0 : index
    %c0_12 = arith.constant 0 : index
    %27 = vector.load %arg5[%c0_11, %c0_12] : memref<16x64xf32, #tpu.memory_space<vmem>>, vector<16x64xf32>
    tpu.vector_store %arg5[%c0_11, %c0_12], %26 {strides = array<i32>} : memref<16x64xf32, #tpu.memory_space<vmem>>, vector<16x64xf32>,
    return
  }
  func.func @transform_0(%arg0: i32) -> (i32, i32) {
    %c0_i32 = arith.constant 0 : i32
    %c0_i32_0 = arith.constant 0 : i32
    return %arg0, %c0_i32 : i32, i32
  }
  func.func @transform_1(%arg0: i32) -> (i32, i32) {
    %c0_i32 = arith.constant 0 : i32
    %c0_i32_0 = arith.constant 0 : i32
    return %arg0, %c0_i32 : i32, i32
  }
  func.func @transform_2(%arg0: i32) -> (i32, i32) {
    %c0_i32 = arith.constant 0 : i32
    %c0_i32_0 = arith.constant 0 : i32
    %c0_i32_1 = arith.constant 0 : i32
    return %c0_i32, %c0_i32_0 : i32, i32
  }
  func.func @transform_3(%arg0: i32) -> (i32, i32) {
    %c0_i32 = arith.constant 0 : i32
    %c0_i32_0 = arith.constant 0 : i32
    %c0_i32_1 = arith.constant 0 : i32
    return %c0_i32, %c0_i32_0 : i32, i32
  }
  func.func @transform_4(%arg0: i32) -> (i32, i32) {
    %c0_i32 = arith.constant 0 : i32
    %c0_i32_0 = arith.constant 0 : i32
    return %arg0, %c0_i32 : i32, i32
  }
}

module attributes {stable_mosaic.version = 11 : i64} {
  func.func @_ln_residual_mlp_kernel(%arg0: i32, %arg1: memref<16x64xf32, #tpu.memory_space<vmem>>, %arg2: memref<16x64xf32, #tpu.memory_space<vmem>>, %arg3: memref<1x64xf32, #tpu.memory_space<vmem>>, %arg4: memref<1x64xf32, #tpu.memory_space<vmem>>, %arg5: memref<4x64x64xbf16, #tpu.memory_space<vmem>>, %arg6: memref<4x1x64xf32, #tpu.memory_space<vmem>>, %arg7: memref<16x64xf32, #tpu.memory_space<vmem>>) attributes {dimension_semantics = [#tpu.dimension_semantics<parallel>], iteration_bounds = array<i64: 2>, scalar_prefetch = 0 : i64, scratch_operands = 0 : i64, tpu.core_type = #tpu.core_type<tc>, window_params = [{transform_indices = @transform_0, window_bounds = array<i64: 16, 64>}, {transform_indices = @transform_1, window_bounds = array<i64: 16, 64>}, {pipeline_mode = #tpu.pipeline_mode<synchronous>, transform_indices = @transform_2, window_bounds = array<i64: 1, 64>}, {pipeline_mode = #tpu.pipeline_mode<synchronous>, transform_indices = @transform_3, window_bounds = array<i64: 1, 64>}, {pipeline_mode = #tpu.pipeline_mode<synchronous>, transform_indices = @transform_4, window_bounds = array<i64: 4, 64, 64>}, {pipeline_mode = #tpu.pipeline_mode<synchronous>, transform_indices = @transform_5, window_bounds = array<i64: 4, 1, 64>}, {transform_indices = @transform_6, window_bounds = array<i64: 16, 64>}]} {
    %c0 = arith.constant 0 : index
    %c0_0 = arith.constant 0 : index
    %0 = vector.load %arg1[%c0, %c0_0] : memref<16x64xf32, #tpu.memory_space<vmem>>, vector<16x64xf32>
    %cst = arith.constant dense<0.000000e+00> : vector<16xf32>
    %1 = vector.multi_reduction <add>, %0, %cst [1] : vector<16x64xf32> to vector<16xf32>
    %2 = vector.shape_cast %1 : vector<16xf32> to vector<16x1xf32>
    %cst_1 = arith.constant 6.400000e+01 : f32
    %3 = vector.broadcast %cst_1 : f32 to vector<16x1xf32>
    %4 = arith.divf %2, %3 : vector<16x1xf32>
    %5 = vector.broadcast %4 : vector<16x1xf32> to vector<16x64xf32>
    %6 = arith.subf %0, %5 : vector<16x64xf32>
    %7 = arith.mulf %6, %6 : vector<16x64xf32>
    %cst_2 = arith.constant dense<0.000000e+00> : vector<16xf32>
    %8 = vector.multi_reduction <add>, %7, %cst_2 [1] : vector<16x64xf32> to vector<16xf32>
    %9 = vector.shape_cast %8 : vector<16xf32> to vector<16x1xf32>
    %cst_3 = arith.constant 6.400000e+01 : f32
    %10 = vector.broadcast %cst_3 : f32 to vector<16x1xf32>
    %11 = arith.divf %9, %10 : vector<16x1xf32>
    %12 = vector.broadcast %4 : vector<16x1xf32> to vector<16x64xf32>
    %13 = arith.subf %0, %12 : vector<16x64xf32>
    %cst_4 = arith.constant 9.99999974E-6 : f32
    %14 = vector.broadcast %cst_4 : f32 to vector<16x1xf32>
    %15 = arith.addf %11, %14 : vector<16x1xf32>
    %16 = math.rsqrt %15 : vector<16x1xf32>
    %17 = vector.broadcast %16 : vector<16x1xf32> to vector<16x64xf32>
    %18 = arith.mulf %13, %17 : vector<16x64xf32>
    %c0_5 = arith.constant 0 : index
    %c0_6 = arith.constant 0 : index
    %19 = vector.load %arg3[%c0_5, %c0_6] : memref<1x64xf32, #tpu.memory_space<vmem>>, vector<1x64xf32>
    %20 = vector.broadcast %19 : vector<1x64xf32> to vector<16x64xf32>
    %21 = arith.mulf %18, %20 : vector<16x64xf32>
    %c0_7 = arith.constant 0 : index
    %c0_8 = arith.constant 0 : index
    %22 = vector.load %arg4[%c0_7, %c0_8] : memref<1x64xf32, #tpu.memory_space<vmem>>, vector<1x64xf32>
    %23 = vector.broadcast %22 : vector<1x64xf32> to vector<16x64xf32>
    %24 = arith.addf %21, %23 : vector<16x64xf32>
    %c0_9 = arith.constant 0 : index
    %c0_10 = arith.constant 0 : index
    %25 = vector.load %arg2[%c0_9, %c0_10] : memref<16x64xf32, #tpu.memory_space<vmem>>, vector<16x64xf32>
    %26 = arith.addf %24, %25 : vector<16x64xf32>
    %27 = arith.truncf %26 : vector<16x64xf32> to vector<16x64xbf16>
    %c0_11 = arith.constant 0 : index
    %c0_12 = arith.constant 0 : index
    %c0_13 = arith.constant 0 : index
    %28 = vector.load %arg5[%c0_11, %c0_12, %c0_13] : memref<4x64x64xbf16, #tpu.memory_space<vmem>>, vector<1x64x64xbf16>
    %29 = vector.shape_cast %28 : vector<1x64x64xbf16> to vector<64x64xbf16>
    %cst_14 = arith.constant dense<0.000000e+00> : vector<16x64xf32>
    %30 = tpu.matmul %27, %29, %cst_14 {dimension_numbers = #tpu.dot_dimension_numbers<[1], [0], [0], [1], [0, 0, 1, 1], [], []>} : vector<16x64xbf16>, vector<64x64xbf16>, vector<16x64xf32> -> vector<16x64xf32>
    %c0_15 = arith.constant 0 : index
    %c0_16 = arith.constant 0 : index
    %c0_17 = arith.constant 0 : index
    %31 = vector.load %arg6[%c0_15, %c0_16, %c0_17] : memref<4x1x64xf32, #tpu.memory_space<vmem>>, vector<1x1x64xf32>
    %32 = vector.shape_cast %31 : vector<1x1x64xf32> to vector<1x64xf32>
    %33 = vector.broadcast %32 : vector<1x64xf32> to vector<16x64xf32>
    %34 = arith.addf %30, %33 : vector<16x64xf32>
    %cst_18 = arith.constant 5.000000e-01 : f32
    %35 = vector.broadcast %cst_18 : f32 to vector<16x64xf32>
    %36 = arith.mulf %35, %34 : vector<16x64xf32>
    %cst_19 = arith.constant 0.707106769 : f32
    %37 = vector.broadcast %cst_19 : f32 to vector<16x64xf32>
    %38 = arith.mulf %34, %37 : vector<16x64xf32>
    %39 = math.erf %38 : vector<16x64xf32>
    %cst_20 = arith.constant 1.000000e+00 : f32
    %40 = vector.broadcast %cst_20 : f32 to vector<16x64xf32>
    %41 = arith.addf %40, %39 : vector<16x64xf32>
    %42 = arith.mulf %36, %41 : vector<16x64xf32>
    %43 = arith.truncf %42 : vector<16x64xf32> to vector<16x64xbf16>
    %c1 = arith.constant 1 : index
    %c0_21 = arith.constant 0 : index
    %c0_22 = arith.constant 0 : index
    %44 = vector.load %arg5[%c1, %c0_21, %c0_22] : memref<4x64x64xbf16, #tpu.memory_space<vmem>>, vector<1x64x64xbf16>
    %45 = vector.shape_cast %44 : vector<1x64x64xbf16> to vector<64x64xbf16>
    %cst_23 = arith.constant dense<0.000000e+00> : vector<16x64xf32>
    %46 = tpu.matmul %43, %45, %cst_23 {dimension_numbers = #tpu.dot_dimension_numbers<[1], [0], [0], [1], [0, 0, 1, 1], [], []>} : vector<16x64xbf16>, vector<64x64xbf16>, vector<16x64xf32> -> vector<16x64xf32>
    %c1_24 = arith.constant 1 : index
    %c0_25 = arith.constant 0 : index
    %c0_26 = arith.constant 0 : index
    %47 = vector.load %arg6[%c1_24, %c0_25, %c0_26] : memref<4x1x64xf32, #tpu.memory_space<vmem>>, vector<1x1x64xf32>
    %48 = vector.shape_cast %47 : vector<1x1x64xf32> to vector<1x64xf32>
    %49 = vector.broadcast %48 : vector<1x64xf32> to vector<16x64xf32>
    %50 = arith.addf %46, %49 : vector<16x64xf32>
    %cst_27 = arith.constant 5.000000e-01 : f32
    %51 = vector.broadcast %cst_27 : f32 to vector<16x64xf32>
    %52 = arith.mulf %51, %50 : vector<16x64xf32>
    %cst_28 = arith.constant 0.707106769 : f32
    %53 = vector.broadcast %cst_28 : f32 to vector<16x64xf32>
    %54 = arith.mulf %50, %53 : vector<16x64xf32>
    %55 = math.erf %54 : vector<16x64xf32>
    %cst_29 = arith.constant 1.000000e+00 : f32
    %56 = vector.broadcast %cst_29 : f32 to vector<16x64xf32>
    %57 = arith.addf %56, %55 : vector<16x64xf32>
    %58 = arith.mulf %52, %57 : vector<16x64xf32>
    %59 = arith.truncf %58 : vector<16x64xf32> to vector<16x64xbf16>
    %c2 = arith.constant 2 : index
    %c0_30 = arith.constant 0 : index
    %c0_31 = arith.constant 0 : index
    %60 = vector.load %arg5[%c2, %c0_30, %c0_31] : memref<4x64x64xbf16, #tpu.memory_space<vmem>>, vector<1x64x64xbf16>
    %61 = vector.shape_cast %60 : vector<1x64x64xbf16> to vector<64x64xbf16>
    %cst_32 = arith.constant dense<0.000000e+00> : vector<16x64xf32>
    %62 = tpu.matmul %59, %61, %cst_32 {dimension_numbers = #tpu.dot_dimension_numbers<[1], [0], [0], [1], [0, 0, 1, 1], [], []>} : vector<16x64xbf16>, vector<64x64xbf16>, vector<16x64xf32> -> vector<16x64xf32>
    %c2_33 = arith.constant 2 : index
    %c0_34 = arith.constant 0 : index
    %c0_35 = arith.constant 0 : index
    %63 = vector.load %arg6[%c2_33, %c0_34, %c0_35] : memref<4x1x64xf32, #tpu.memory_space<vmem>>, vector<1x1x64xf32>
    %64 = vector.shape_cast %63 : vector<1x1x64xf32> to vector<1x64xf32>
    %65 = vector.broadcast %64 : vector<1x64xf32> to vector<16x64xf32>
    %66 = arith.addf %62, %65 : vector<16x64xf32>
    %cst_36 = arith.constant 5.000000e-01 : f32
    %67 = vector.broadcast %cst_36 : f32 to vector<16x64xf32>
    %68 = arith.mulf %67, %66 : vector<16x64xf32>
    %cst_37 = arith.constant 0.707106769 : f32
    %69 = vector.broadcast %cst_37 : f32 to vector<16x64xf32>
    %70 = arith.mulf %66, %69 : vector<16x64xf32>
    %71 = math.erf %70 : vector<16x64xf32>
    %cst_38 = arith.constant 1.000000e+00 : f32
    %72 = vector.broadcast %cst_38 : f32 to vector<16x64xf32>
    %73 = arith.addf %72, %71 : vector<16x64xf32>
    %74 = arith.mulf %68, %73 : vector<16x64xf32>
    %75 = arith.truncf %74 : vector<16x64xf32> to vector<16x64xbf16>
    %c3 = arith.constant 3 : index
    %c0_39 = arith.constant 0 : index
    %c0_40 = arith.constant 0 : index
    %76 = vector.load %arg5[%c3, %c0_39, %c0_40] : memref<4x64x64xbf16, #tpu.memory_space<vmem>>, vector<1x64x64xbf16>
    %77 = vector.shape_cast %76 : vector<1x64x64xbf16> to vector<64x64xbf16>
    %cst_41 = arith.constant dense<0.000000e+00> : vector<16x64xf32>
    %78 = tpu.matmul %75, %77, %cst_41 {dimension_numbers = #tpu.dot_dimension_numbers<[1], [0], [0], [1], [0, 0, 1, 1], [], []>} : vector<16x64xbf16>, vector<64x64xbf16>, vector<16x64xf32> -> vector<16x64xf32>
    %c3_42 = arith.constant 3 : index
    %c0_43 = arith.constant 0 : index
    %c0_44 = arith.constant 0 : index
    %79 = vector.load %arg6[%c3_42, %c0_43, %c0_44] : memref<4x1x64xf32, #tpu.memory_space<vmem>>, vector<1x1x64xf32>
    %80 = vector.shape_cast %79 : vector<1x1x64xf32> to vector<1x64xf32>
    %81 = vector.broadcast %80 : vector<1x64xf32> to vector<16x64xf32>
    %82 = arith.addf %78, %81 : vector<16x64xf32>
    %cst_45 = arith.constant 5.000000e-01 : f32
    %83 = vector.broadcast %cst_45 : f32 to vector<16x64xf32>
    %84 = arith.mulf %83, %82 : vector<16x64xf32>
    %cst_46 = arith.constant 0.707106769 : f32
    %85 = vector.broadcast %cst_46 : f32 to vector<16x64xf32>
    %86 = arith.mulf %82, %85 : vector<16x64xf32>
    %87 = math.erf %86 : vector<16x64xf32>
    %cst_47 = arith.constant 1.000000e+00 : f32
    %88 = vector.broadcast %cst_47 : f32 to vector<16x64xf32>
    %89 = arith.addf %88, %87 : vector<16x64xf32>
    %90 = arith.mulf %84, %89 : vector<16x64xf32>
    %c0_48 = arith.constant 0 : index
    %c0_49 = arith.constant 0 : index
    %91 = vector.load %arg7[%c0_48, %c0_49] : memref<16x64xf32, #tpu.memory_space<vmem>>, vector<16x64xf32>
    tpu.vector_store %arg7[%c0_48, %c0_49], %90 {strides = array<i32>} : memref<16x64xf32, #tpu.memory_space<vmem>>, vector<16x64xf32>,
    return
  }
  func.func @transform_0(%arg0: i32) -> (i32, i32) {
    %c0_i32 = arith.constant 0 : i32
    %c0_i32_0 = arith.constant 0 : i32
    return %arg0, %c0_i32 : i32, i32
  }
  func.func @transform_1(%arg0: i32) -> (i32, i32) {
    %c0_i32 = arith.constant 0 : i32
    %c0_i32_0 = arith.constant 0 : i32
    return %arg0, %c0_i32 : i32, i32
  }
  func.func @transform_2(%arg0: i32) -> (i32, i32) {
    %c0_i32 = arith.constant 0 : i32
    %c0_i32_0 = arith.constant 0 : i32
    %c0_i32_1 = arith.constant 0 : i32
    return %c0_i32, %c0_i32_0 : i32, i32
  }
  func.func @transform_3(%arg0: i32) -> (i32, i32) {
    %c0_i32 = arith.constant 0 : i32
    %c0_i32_0 = arith.constant 0 : i32
    %c0_i32_1 = arith.constant 0 : i32
    return %c0_i32, %c0_i32_0 : i32, i32
  }
  func.func @transform_4(%arg0: i32) -> (i32, i32, i32) {
    %c0_i32 = arith.constant 0 : i32
    %c0_i32_0 = arith.constant 0 : i32
    %c0_i32_1 = arith.constant 0 : i32
    %c0_i32_2 = arith.constant 0 : i32
    return %c0_i32, %c0_i32_0, %c0_i32_1 : i32, i32, i32
  }
  func.func @transform_5(%arg0: i32) -> (i32, i32, i32) {
    %c0_i32 = arith.constant 0 : i32
    %c0_i32_0 = arith.constant 0 : i32
    %c0_i32_1 = arith.constant 0 : i32
    %c0_i32_2 = arith.constant 0 : i32
    return %c0_i32, %c0_i32_0, %c0_i32_1 : i32, i32, i32
  }
  func.func @transform_6(%arg0: i32) -> (i32, i32) {
    %c0_i32 = arith.constant 0 : i32
    %c0_i32_0 = arith.constant 0 : i32
    return %arg0, %c0_i32 : i32, i32
  }
}

</mosaic_0001>

<bundles_post_ra>
// kernel: is_stable_gnn_forward.11
= control target key start
LH: loop header
LB: loop body
LE: loop exit
PB: predicated region body
PF: predicated region fallthrough
CT: control target
= control target key end

     0   :  { %s510_s18 = smov 0   ;;  %s546_s0 = inlined_call_operand.vmem [shape: f32[64,8], index: 0, kind: input, shape index: {}]   ;;  %s547_s1 = inlined_call_operand.vmem [shape: bf16[8,128], index: 1, kind: input, shape index: {}]   ;;  %s548_s2 = inlined_call_operand.vmem [shape: f32[1,128], index: 2, kind: input, shape index: {}]   ;;  %s549_s3 = inlined_call_operand.vmem [shape: f32[1,128], index: 3, kind: input, shape index: {}]   ;;  %s550_s4 = inlined_call_operand.vmem [shape: f32[1,128], index: 4, kind: input, shape index: {}]   ;;  %s551_s5 = inlined_call_operand.vmem [shape: f32[64,128], index: 5, kind: output, shape index: {}]  }
   0x1 LB: > { %s430_s19 = sadd.s32 4294967295, %s478_s18   ;;  %p434_p0 = scmp.ge.s32.totalorder %s478_s18, 1  ;;  %s478_s18 = sphi %s510_s18, %s15_s18  }
   0x2   : > { %p188_p1 = scmp.lt.s32.totalorder %s478_s18, 3 }
   0x4   : > { %p189_p2 = pnand %p434_p0, %p188_p1 }
   0x5   : > { %v235_v0 = vld [vmem:[%s547_s1] sm:$0xf] (!%p189_p2)  ;;  %vm250_vm0 = vcmask (!%p189_p2), 1043456   ;;  %s435_s22 = sshll.u32 (!%p189_p2), %s430_s19, 2  ;;  %vm243_vm1 = vcmask (!%p189_p2), 64512  }
   0x6   : > { %192 = sbr.rel (%p189_p2) target bundleno = 555 (0x22b), region = 40  ;;  %455 = vmatprep.subr.msk.bf16.mxu0 (!%p189_p2), %vm250_vm0, %v235_v0  ;;  %v252_v1 = vsel (!%p189_p2), %vm250_vm0, %v235_v0, 0  ;;  %p217_p3 = scmp.lt.s32.totalorder (!%p189_p2), %s435_s22, 7  ;;  %v439_v8 = vld [vmem:[%s548_s2] ss:$0 sm:$0xff] (!%p189_p2) }
   0x7   : > { %450 = vmatpush3.bf16.msra.mxu0 (!%p189_p2), %v252_v1  ;;  %v442_v46 = vld [vmem:[%s549_s3] ss:$0 sm:$0xff] (!%p189_p2) }
   0x8   : > { %v443_v48 = vld [vmem:[%s550_s4] ss:$0 sm:$0xff] (!%p189_p2) }
   0xd   : > { %s553_s22 = smov (!%p217_p3, %s435_s22), 7 }
   0xe   : > { %s436_s23 = sshll.u32 %s553_s22, 3 }
   0xf   : > { %s220_s26 = scalar_lea.vmem %s546_s0, %s436_s23  ;;  %s226_s10 = scalar_lea.vmem %s551_s5, %s436_s23 }
  0x10   : > { %v229_v2 = vld [vmem:[%s220_s26] sm:$0xff]  ;;  %v230_v3 = vld [vmem:[%s220_s26 + $0x8] sm:$0xff]  ;;  %v231_v4 = vld [vmem:[%s220_s26 + $0x10] sm:$0xff] }
  0x11   : > { %v233_v5 = vpack.c.bf16 %v230_v3, %v229_v2  ;;  %v232_v6 = vld [vmem:[%s220_s26 + $0x18] sm:$0xff] }
  0x12   : > { %v234_v7 = vpack.c.bf16 %v232_v6, %v231_v4 }
  0x13   : > { %451 = vmatprep.mubr.msk.bf16.mxu0 %vm243_vm1, %v233_v5 }
  0x14   : > { %452 = vmatmul.mubr.msk.bf16.vlgmr.msra.gmra.mrb[0].mxu0 %vm243_vm1, %v234_v7 }
  0xe7   : > { %v453_v9 = vpop.f32.mrb[0].mxu0 }
  0xe8   : > { %v297_v10 = vadd.f32 %v453_v9, %v439_v8  ;;  %v288_v11 = vpop.f32.mrb[1].mxu0 }
  0xe9   : > { %v289_v12 = vadd.f32 %v439_v8, %v288_v11  ;;  %v454_v13 = vpop.f32.mrb[2].mxu0 }
  0xea   : > { %307 = vadd.xlane.f32.xlu1 %v297_v10  ;;  %v291_v14 = vpop.f32.mrb[3].mxu0  ;;  %v300_v15 = vadd.f32 %v454_v13, %v439_v8 }
  0xeb   : > { %303 = vadd.xlane.f32.xlu0 %v289_v12  ;;  %v292_v16 = vadd.f32 %v439_v8, %v291_v14 }
  0xee   : > { %309 = vadd.xlane.f32.xlu1 %v300_v15 }
  0xef   : > { %305 = vadd.xlane.f32.xlu0 %v292_v16 }
 0x177   : > { %v308_v17 = vpop.xlane.xlu1 %307 }
 0x178   : > { %v304_v18 = vpop.xlane.xlu0 %303  ;;  %v314_v19 = vmul.f32 0.0078125, %v308_v17 }
 0x179   : > { %v312_v20 = vmul.f32 0.0078125, %v304_v18 }
 0x17a   : > { %v318_v24 = vsub.f32 %v297_v10, %v314_v19 }
 0x17b   : > { %v316_v21 = vsub.f32 %v289_v12, %v312_v20  ;;  %v310_v22 = vpop.xlane.xlu1 %309 }
 0x17c   : > { %v306_v23 = vpop.xlane.xlu0 %305  ;;  %v315_v25 = vmul.f32 0.0078125, %v310_v22  ;;  %v322_v30 = vmul.f32 %v318_v24, %v318_v24 }
 0x17d   : > { %v313_v26 = vmul.f32 0.0078125, %v306_v23  ;;  %v320_v27 = vmul.f32 %v316_v21, %v316_v21 }
 0x17e   : > { %v319_v29 = vsub.f32 %v300_v15, %v315_v25 }
 0x17f   : > { %v317_v28 = vsub.f32 %v292_v16, %v313_v26  ;;  %324 = vadd.xlane.f32.xlu0 %v320_v27 }
 0x180   : > { %v323_v32 = vmul.f32 %v319_v29, %v319_v29 }
 0x181   : > { %v321_v31 = vmul.f32 %v317_v28, %v317_v28 }
 0x183   : > { %328 = vadd.xlane.f32.xlu0 %v322_v30  ;;  %326 = vadd.xlane.f32.xlu1 %v321_v31 }
 0x187   : > { %330 = vadd.xlane.f32.xlu1 %v323_v32 }
 0x20c   : > { %v325_v33 = vpop.xlane.xlu0 %324 }
 0x20d   : > { %v332_v34 = vmul.f32 0.0078125, %v325_v33 }
 0x20f   : > { %v336_v35 = vadd.f32 1e-05, %v332_v34 }
 0x210   : > { %v327_v36 = vpop.xlane.xlu1 %326  ;;  %v329_v37 = vpop.xlane.xlu0 %328 }
 0x211   : > { %464 = vrsqrt.f32 %v336_v35  ;;  %v333_v38 = vmul.f32 0.0078125, %v327_v36  ;;  %v334_v39 = vmul.f32 0.0078125, %v329_v37 }
 0x213   : > { %v337_v40 = vadd.f32 1e-05, %v333_v38  ;;  %v338_v41 = vadd.f32 1e-05, %v334_v39 }
 0x214   : > { %v331_v42 = vpop.xlane.xlu1 %330 }
 0x215   : > { %466 = vrsqrt.f32 %v337_v40  ;;  %v335_v43 = vmul.f32 0.0078125, %v331_v42 }
 0x216   : > { %468 = vrsqrt.f32 %v338_v41 }
 0x217   : > { %v339_v44 = vadd.f32 1e-05, %v335_v43 }
 0x219   : > { %470 = vrsqrt.f32 %v339_v44 }
 0x21b   : > { %v465_v45 = vpop.eup %464 }
 0x21c   : > { %v344_v47 = vmul.f32 %v465_v45, %v316_v21 }
 0x21e   : > { %v355_v49 = vmul.f32 %v442_v46, %v344_v47 }
 0x21f   : > { %v467_v50 = vpop.eup %466 }
 0x220   : > { %v469_v51 = vpop.eup %468  ;;  %v366_v52 = vadd.f32 %v443_v48, %v355_v49  ;;  %v345_v53 = vmul.f32 %v467_v50, %v317_v28 }
 0x221   : > { %v346_v54 = vmul.f32 %v469_v51, %v318_v24 }
 0x222   : > { %370 = vst [vmem:[%s226_s10] sm:$0xff] %v366_v52  ;;  %v356_v55 = vmul.f32 %v442_v46, %v345_v53 }
 0x223   : > { %v471_v56 = vpop.eup %470  ;;  %v357_v57 = vmul.f32 %v442_v46, %v346_v54 }
 0x224   : > { %v367_v58 = vadd.f32 %v443_v48, %v356_v55  ;;  %v347_v59 = vmul.f32 %v471_v56, %v319_v29 }
 0x225   : > { %v368_v60 = vadd.f32 %v443_v48, %v357_v57 }
 0x226   : > { %371 = vst [vmem:[%s226_s10 + $0x8] sm:$0xff] %v367_v58  ;;  %v358_v61 = vmul.f32 %v442_v46, %v347_v59 }
 0x227   : > { %372 = vst [vmem:[%s226_s10 + $0x10] sm:$0xff] %v368_v60 }
 0x228   : > { %v369_v62 = vadd.f32 %v443_v48, %v358_v61 }
 0x22a   : > { %373 = vst [vmem:[%s226_s10 + $0x18] sm:$0xff] %v369_v62 }
 0x22b PF: > { %s15_s18 = sadd.s32 1, %s478_s18  }
 0x22c   : > { %p12_p4 = scmp.ge.s32.totalorder %s15_s18, 4  }
 0x22e   :  { %14 = sbr.rel (!%p12_p4) target bundleno = 1 (0x1), region = 70 }

// kernel: is_stable_gnn_forward.10
= control target key start
LH: loop header
LB: loop body
LE: loop exit
PB: predicated region body
PF: predicated region fallthrough
CT: control target
= control target key end

     0   :  { %s475_s18 = smov 0   ;;  %s517_s0 = inlined_call_operand.vmem [shape: f32[32,16], index: 0, kind: input, shape index: {}]   ;;  %s518_s1 = inlined_call_operand.vmem [shape: bf16[16,64], index: 1, kind: input, shape index: {}]   ;;  %s519_s2 = inlined_call_operand.vmem [shape: f32[1,64], index: 2, kind: input, shape index: {}]   ;;  %s520_s3 = inlined_call_operand.vmem [shape: f32[1,64], index: 3, kind: input, shape index: {}]   ;;  %s521_s4 = inlined_call_operand.vmem [shape: f32[1,64], index: 4, kind: input, shape index: {}]   ;;  %s522_s5 = inlined_call_operand.vmem [shape: f32[32,64], index: 5, kind: output, shape index: {}]  }
   0x1 LB: > { %s396_s19 = sadd.s32 4294967295, %s441_s18   ;;  %p400_p0 = scmp.ge.s32.totalorder %s441_s18, 1  ;;  %s441_s18 = sphi %s475_s18, %s15_s18  }
   0x2   : > { %p188_p1 = scmp.lt.s32.totalorder %s441_s18, 3 }
   0x4   : > { %p189_p2 = pnand %p400_p0, %p188_p1 }
   0x5   : > { %v430_v0 = vld [vmem:[%s518_s1] sm:$0xff] (!%p189_p2)   ;;  %v443_v1 = vmov (!%p189_p2), 0.0   ;;  %s401_s22 = sshll.u32 (!%p189_p2), %s396_s19, 1  ;;  %vm444_vm0 = vmmov (!%p189_p2), 0   ;;  %vm247_vm1 = vcmask (!%p189_p2), 130048   ;;  %vm292_vm2 = vcmask (!%p189_p2), 523264  }
   0x6   : > { %192 = sbr.rel (%p189_p2) target bundleno = 551 (0x227), region = 40  ;;  %414 = vmatprep.subr.bf16.mxu0 (!%p189_p2), %v443_v1  ;;  %416 = vmatprep.mubr.msk.bf16.mxu0 (!%p189_p2), %vm444_vm0, %v443_v1  ;;  %p217_p3 = scmp.lt.s32.totalorder (!%p189_p2), %s401_s22, 3  ;;  %v405_v5 = vld [vmem:[%s519_s2] ss:$0 sm:$0xff] (!%p189_p2) }
   0x7   : > { %415 = vmatpush3.bf16.msra.mxu0 (!%p189_p2), %v430_v0  ;;  %v408_v31 = vld [vmem:[%s520_s3] ss:$0 sm:$0xff] (!%p189_p2) }
   0x8   : > { %v409_v33 = vld [vmem:[%s521_s4] ss:$0 sm:$0xff] (!%p189_p2) }
   0xd   : > { %s524_s22 = smov (!%p217_p3, %s401_s22), 3 }
   0xe   : > { %s402_s23 = sshll.u32 %s524_s22, 3 }
   0xf   : > { %s220_s26 = scalar_lea.vmem %s517_s0, %s402_s23  ;;  %s226_s10 = scalar_lea.vmem %s522_s5, %s402_s23 }
  0x10   : > { %v229_v2 = vld [vmem:[%s220_s26] sm:$0xff]  ;;  %v230_v3 = vld [vmem:[%s220_s26 + $0x8] sm:$0xff] }
  0x11   : > { %v231_v4 = vpack.c.bf16 %v230_v3, %v229_v2 }
  0x13   : > { %417 = vmatmul.mubr.msk.bf16.vlgmr.msra.gmra.mrb[0].mxu0 %vm247_vm1, %v231_v4 }
  0xe6   : > { %v285_v6 = vpop.f32.mrb[0].mxu0 }
  0xe7   : > { %v286_v7 = vadd.f32 %v405_v5, %v285_v6  ;;  %v418_v8 = vpop.f32.mrb[1].mxu0 }
  0xe8   : > { %v288_v9 = vpop.f32.mrb[2].mxu0 }
  0xe9   : > { %v289_v10 = vadd.f32 %v405_v5, %v288_v9  ;;  %v419_v11 = vpop.f32.mrb[3].mxu0  ;;  %v293_v12 = vsel %vm292_vm2, %v286_v7, 0.0 }
  0xea   : > { %294 = vadd.xlane.f32.xlu0 %v293_v12 }
  0xeb   : > { %v296_v13 = vsel %vm292_vm2, %v289_v10, 0.0 }
  0xee   : > { %297 = vadd.xlane.f32.xlu0 %v296_v13 }
 0x177   : > { %v295_v14 = vpop.xlane.xlu0 %294 }
 0x178   : > { %v300_v15 = vmul.f32 0.015625, %v295_v14 }
 0x17a   : > { %v302_v16 = vsub.f32 %v286_v7, %v300_v15 }
 0x17b   : > { %v298_v17 = vpop.xlane.xlu0 %297 }
 0x17c   : > { %v301_v18 = vmul.f32 0.015625, %v298_v17  ;;  %v304_v19 = vmul.f32 %v302_v16, %v302_v16 }
 0x17e   : > { %v303_v20 = vsub.f32 %v289_v10, %v301_v18  ;;  %v306_v21 = vsel %vm292_vm2, %v304_v19, 0.0 }
 0x17f   : > { %307 = vadd.xlane.f32.xlu1 %v306_v21 }
 0x180   : > { %v305_v22 = vmul.f32 %v303_v20, %v303_v20 }
 0x182   : > { %v309_v23 = vsel %vm292_vm2, %v305_v22, 0.0 }
 0x183   : > { %310 = vadd.xlane.f32.xlu1 %v309_v23 }
 0x20c   : > { %v308_v24 = vpop.xlane.xlu1 %307 }
 0x20d   : > { %v312_v25 = vmul.f32 0.015625, %v308_v24 }
 0x20f   : > { %v314_v26 = vadd.f32 1e-05, %v312_v25 }
 0x210   : > { %v311_v27 = vpop.xlane.xlu1 %310 }
 0x211   : > { %431 = vrsqrt.f32 %v314_v26  ;;  %v313_v28 = vmul.f32 0.015625, %v311_v27 }
 0x213   : > { %v315_v29 = vadd.f32 1e-05, %v313_v28 }
 0x215   : > { %433 = vrsqrt.f32 %v315_v29 }
 0x21b   : > { %v432_v30 = vpop.eup %431 }
 0x21c   : > { %v318_v32 = vmul.f32 %v432_v30, %v302_v16 }
 0x21e   : > { %v327_v34 = vmul.f32 %v408_v31, %v318_v32 }
 0x21f   : > { %v434_v35 = vpop.eup %433 }
 0x220   : > { %v336_v36 = vadd.f32 %v409_v33, %v327_v34  ;;  %v319_v37 = vmul.f32 %v434_v35, %v303_v20 }
 0x222   : > { %338 = vst.msk [vmem:[%s226_s10] sm:$0xff] %vm292_vm2, %v336_v36  ;;  %v328_v38 = vmul.f32 %v408_v31, %v319_v37 }
 0x224   : > { %v337_v39 = vadd.f32 %v409_v33, %v328_v38 }
 0x226   : > { %339 = vst.msk [vmem:[%s226_s10 + $0x8] sm:$0xff] %vm292_vm2, %v337_v39 }
 0x227 PF: > { %s15_s18 = sadd.s32 1, %s441_s18  }
 0x228   : > { %p12_p4 = scmp.ge.s32.totalorder %s15_s18, 4  }
 0x22a   :  { %14 = sbr.rel (!%p12_p4) target bundleno = 1 (0x1), region = 70 }

// kernel: is_stable_gnn_forward.13
= control target key start
LH: loop header
LB: loop body
LE: loop exit
PB: predicated region body
PF: predicated region fallthrough
CT: control target
= control target key end

     0   :  { %s405_s15 = smov 0   ;;  %s442_s0 = inlined_call_operand.vmem [shape: f32[32,64], index: 0, kind: input, shape index: {}]   ;;  %s443_s1 = inlined_call_operand.vmem [shape: f32[32,64], index: 1, kind: input, shape index: {}]   ;;  %s444_s2 = inlined_call_operand.vmem [shape: f32[1,64], index: 2, kind: input, shape index: {}]   ;;  %s445_s3 = inlined_call_operand.vmem [shape: f32[1,64], index: 3, kind: input, shape index: {}]   ;;  %s446_s4 = inlined_call_operand.vmem [shape: f32[32,64], index: 4, kind: output, shape index: {}]  }
   0x1 LB: > { %s345_s16 = sadd.s32 4294967295, %s378_s15   ;;  %p349_p0 = scmp.ge.s32.totalorder %s378_s15, 1  ;;  %s378_s15 = sphi %s405_s15, %s14_s15  }
   0x2   : > { %p174_p1 = scmp.lt.s32.totalorder %s378_s15, 3 }
   0x4   : > { %p175_p2 = pnand %p349_p0, %p174_p1 }
   0x5   : > { %s350_s17 = sshll.u32 (!%p175_p2), %s345_s16, 1  ;;  %vm225_vm0 = vcmask (!%p175_p2), 523264   ;;  %v356_v21 = vld [vmem:[%s444_s2] ss:$0 sm:$0xff] (!%p175_p2) }
   0x6   : > { %178 = sbr.rel (%p175_p2) target bundleno = 337 (0x151), region = 36  ;;  %p206_p3 = scmp.lt.s32.totalorder (!%p175_p2), %s350_s17, 3  ;;  %v357_v23 = vld [vmem:[%s445_s3] ss:$0 sm:$0xff] (!%p175_p2) }
   0xd   : > { %s448_s17 = smov (!%p206_p3, %s350_s17), 3 }
   0xe   : > { %s413_s18 = sshll.u32 %s448_s17, 3 }
   0xf   : > { %s209_s21 = scalar_lea.vmem %s442_s0, %s413_s18  ;;  %s215_s26 = scalar_lea.vmem %s443_s1, %s413_s18 }
  0x10   : > { %v223_v0 = vld [vmem:[%s209_s21] sm:$0xff]  ;;  %v224_v2 = vld [vmem:[%s209_s21 + $0x8] sm:$0xff]  ;;  %s221_s5 = scalar_lea.vmem %s446_s4, %s413_s18 }
  0x11   : > { %v226_v1 = vsel %vm225_vm0, %v223_v0, 0.0  ;;  %v229_v3 = vsel %vm225_vm0, %v224_v2, 0.0  ;;  %v271_v26 = vld [vmem:[%s215_s26] sm:$0xff]  ;;  %v272_v31 = vld [vmem:[%s215_s26 + $0x8] sm:$0xff] }
  0x12   : > { %227 = vadd.xlane.f32.xlu0 %v226_v1 }
  0x16   : > { %230 = vadd.xlane.f32.xlu0 %v229_v3 }
  0x9f   : > { %v228_v4 = vpop.xlane.xlu0 %227 }
  0xa0   : > { %v233_v5 = vmul.f32 0.015625, %v228_v4 }
  0xa2   : > { %v235_v6 = vsub.f32 %v223_v0, %v233_v5 }
  0xa3   : > { %v231_v7 = vpop.xlane.xlu0 %230 }
  0xa4   : > { %v234_v8 = vmul.f32 0.015625, %v231_v7  ;;  %v237_v9 = vmul.f32 %v235_v6, %v235_v6 }
  0xa6   : > { %v236_v10 = vsub.f32 %v224_v2, %v234_v8  ;;  %v239_v11 = vsel %vm225_vm0, %v237_v9, 0.0 }
  0xa7   : > { %240 = vadd.xlane.f32.xlu1 %v239_v11 }
  0xa8   : > { %v238_v12 = vmul.f32 %v236_v10, %v236_v10 }
  0xaa   : > { %v242_v13 = vsel %vm225_vm0, %v238_v12, 0.0 }
  0xab   : > { %243 = vadd.xlane.f32.xlu1 %v242_v13 }
 0x134   : > { %v241_v14 = vpop.xlane.xlu1 %240 }
 0x135   : > { %v245_v15 = vmul.f32 0.015625, %v241_v14 }
 0x137   : > { %v247_v16 = vadd.f32 1e-05, %v245_v15 }
 0x138   : > { %v244_v17 = vpop.xlane.xlu1 %243 }
 0x139   : > { %368 = vrsqrt.f32 %v247_v16  ;;  %v246_v18 = vmul.f32 0.015625, %v244_v17 }
 0x13b   : > { %v248_v19 = vadd.f32 1e-05, %v246_v18 }
 0x13d   : > { %370 = vrsqrt.f32 %v248_v19 }
 0x143   : > { %v369_v20 = vpop.eup %368 }
 0x144   : > { %v251_v22 = vmul.f32 %v369_v20, %v235_v6 }
 0x146   : > { %v260_v24 = vmul.f32 %v356_v21, %v251_v22 }
 0x147   : > { %v371_v25 = vpop.eup %370 }
 0x148   : > { %v269_v27 = vadd.f32 %v357_v23, %v260_v24  ;;  %v252_v28 = vmul.f32 %v371_v25, %v236_v10 }
 0x14a   : > { %v273_v29 = vadd.f32 %v271_v26, %v269_v27  ;;  %v261_v30 = vmul.f32 %v356_v21, %v252_v28 }
 0x14c   : > { %275 = vst.msk [vmem:[%s221_s5] sm:$0xff] %vm225_vm0, %v273_v29  ;;  %v270_v32 = vadd.f32 %v357_v23, %v261_v30 }
 0x14e   : > { %v274_v33 = vadd.f32 %v272_v31, %v270_v32 }
 0x150   : > { %276 = vst.msk [vmem:[%s221_s5 + $0x8] sm:$0xff] %vm225_vm0, %v274_v33 }
 0x151 PF: > { %s14_s15 = sadd.s32 1, %s378_s15  }
 0x152   : > { %p11_p4 = scmp.ge.s32.totalorder %s14_s15, 4  }
 0x154   :  { %13 = sbr.rel (!%p11_p4) target bundleno = 1 (0x1), region = 69 }

// kernel: is_stable_gnn_forward.12
= control target key start
LH: loop header
LB: loop body
LE: loop exit
PB: predicated region body
PF: predicated region fallthrough
CT: control target
= control target key end

     0   :  { %s2382_s29 = smov 0   ;;  %s2776_s0 = inlined_call_operand.vmem [shape: bf16[64,64], index: 0, kind: input, shape index: {}]   ;;  %s2777_s1 = inlined_call_operand.vmem [shape: bf16[64,64], index: 1, kind: input, shape index: {}]   ;;  %s2778_s2 = inlined_call_operand.vmem [shape: bf16[64,128], index: 2, kind: input, shape index: {}]   ;;  %s2779_s3 = inlined_call_operand.vmem [shape: bf16[64,128], index: 3, kind: input, shape index: {}]   ;;  %s2780_s4 = inlined_call_operand.vmem [shape: bf16[64,128], index: 4, kind: input, shape index: {}]   ;;  %s2781_s5 = inlined_call_operand.vmem [shape: bf16[128,128], index: 5, kind: input, shape index: {}]   ;;  %s2782_s6 = inlined_call_operand.vmem [shape: f32[1,128], index: 6, kind: input, shape index: {}]   ;;  %s2783_s7 = inlined_call_operand.vmem [shape: bf16[64,768], index: 7, kind: input, shape index: {}]   ;;  %s2784_s8 = inlined_call_operand.vmem [shape: f32[1,768], index: 8, kind: input, shape index: {}]   ;;  %s2785_s9 = inlined_call_operand.vmem [shape: f32[256,16], index: 9, kind: input, shape index: {}]   ;;  %s2786_s10 = inlined_call_operand.vmem [shape: f32[16,16], index: 10, kind: input, shape index: {}]   ;;  %s2787_s11 = inlined_call_operand.vmem [shape: f32[16,256], index: 11, kind: input, shape index: {}]   ;;  %s2788_s12 = inlined_call_operand.vmem [shape: bf16[256,64], index: 12, kind: input, shape index: {}]   ;;  %s2789_s13 = inlined_call_operand.vmem [shape: f32[1,64], index: 13, kind: input, shape index: {}]   ;;  %s2790_s14 = inlined_call_operand.vmem [shape: f32[64,64], index: 14, kind: output, shape index: {}]  }
   0x1 LB: > { %s1888_s30 = sadd.s32 4294967295, %s2302_s29   ;;  %p1892_p0 = scmp.ge.s32.totalorder %s2302_s29, 1  ;;  %s2302_s29 = sphi %s2382_s29, %s24_s29  }
   0x2   : > { %p435_p1 = scmp.lt.s32.totalorder %s2302_s29, 3 }
   0x4   : > { %p436_p2 = pnand %p1892_p0, %p435_p1 }
   0x5   : > { %v2198_v0 = vld [vmem:[%s2779_s3] sm:$0xff] (!%p436_p2)   ;;  %s1893_s17 = sshll.u32 (!%p436_p2), %s1888_s30, 2  ;;  %v2199_v1 = vld [vmem:[%s2779_s3 + $0x8] sm:$0xff] (!%p436_p2)   ;;  %v2200_v2 = vld [vmem:[%s2779_s3 + $0x10] sm:$0xff] (!%p436_p2)   ;;  %vm574_vm0 = vcmask (!%p436_p2), 523264   ;;  %v2304_v53 = vmov (!%p436_p2), 0  }
   0x6   : > { %439 = sbr.rel (%p436_p2) target bundleno = 1698 (0x6a2), region = 76  ;;  %p492_p3 = scmp.lt.s32.totalorder (!%p436_p2), %s1893_s17, 7  ;;  %2097 = vmatprep.subr.bf16.mxu0 (!%p436_p2), %v2198_v0  ;;  %v2201_v4 = vld [vmem:[%s2779_s3 + $0x18] sm:$0xff] (!%p436_p2)   ;;  %v2208_v5 = vld [vmem:[%s2780_s4] sm:$0xff] (!%p436_p2)   ;;  %v2210_v7 = vld [vmem:[%s2780_s4 + $0x8] sm:$0xff] (!%p436_p2)   ;;  %vm1371_vm1 = vcmask (!%p436_p2), 130048  }
   0x7   : > { %2098 = vmatpush3.bf16.msra.mxu0 (!%p436_p2), %v2198_v0  ;;  %v2203_v6 = vld [vmem:[%s2781_s5] sm:$0xff] (!%p436_p2)   ;;  %2085 = vmatprep.subr.bf16.mxu1 (!%p436_p2), %v2208_v5  ;;  %v2212_v9 = vld [vmem:[%s2780_s4 + $0x10] sm:$0xff] (!%p436_p2)   ;;  %v2205_v10 = vld [vmem:[%s2781_s5 + $0x8] sm:$0xff] (!%p436_p2)   ;;  %s2305_s24 = smov (!%p436_p2), 64  }
   0x8   : > { %2099 = vmatprep.subr.bf16.mxu0 (!%p436_p2), %v2199_v1  ;;  %2086 = vmatpush3.bf16.msra.mxu1 (!%p436_p2), %v2208_v5  ;;  %v2214_v12 = vld [vmem:[%s2780_s4 + $0x18] sm:$0xff] (!%p436_p2)   ;;  %v2206_v13 = vld [vmem:[%s2781_s5 + $0x10] sm:$0xff] (!%p436_p2)   ;;  %v2209_v17 = vld [vmem:[%s2781_s5 + $0x20] sm:$0xff] (!%p436_p2)  }
   0x9   : > { %2087 = vmatprep.subr.bf16.mxu1 (!%p436_p2), %v2210_v7  ;;  %v2207_v15 = vld [vmem:[%s2781_s5 + $0x18] sm:$0xff] (!%p436_p2)   ;;  %v2211_v18 = vld [vmem:[%s2781_s5 + $0x28] sm:$0xff] (!%p436_p2)   ;;  %v2213_v19 = vld [vmem:[%s2781_s5 + $0x30] sm:$0xff] (!%p436_p2)  }
   0xa   : > { %v2216_v20 = vld [vmem:[%s2781_s5 + $0x38] sm:$0xff] (!%p436_p2)   ;;  %v2225_v24 = vld [vmem:[%s2783_s7 + $0x34] ss:$24 sps:$4 sm:$0xff] (!%p436_p2)   ;;  %v2223_v25 = vld [vmem:[%s2783_s7 + $0x30] ss:$24 sps:$4 sm:$0xff] (!%p436_p2)  }
   0xb   : > { %2100 = vmatpush3.bf16.msra.mxu0 (!%p436_p2), %v2199_v1  ;;  %v2220_v22 = vld [vmem:[%s2783_s7] ss:$24 sps:$4 sm:$0xff] (!%p436_p2)   ;;  %v2222_v23 = vld [vmem:[%s2783_s7 + $0x4] ss:$24 sps:$4 sm:$0xff] (!%p436_p2)   ;;  %v2231_v49 = vld [vmem:[%s2783_s7 + $0x94] ss:$24 sps:$4 sm:$0xff] (!%p436_p2)  }
   0xc   : > { %2101 = vmatprep.subr.bf16.mxu0 (!%p436_p2), %v2200_v2  ;;  %2088 = vmatpush3.bf16.msra.mxu1 (!%p436_p2), %v2210_v7  ;;  %v1927_v31 = vld [vmem:[%s2782_s6] ss:$0 sm:$0xff] (!%p436_p2)  ;;  %v2228_v47 = vld [vmem:[%s2783_s7 + $0x64] ss:$24 sps:$4 sm:$0xff] (!%p436_p2)   ;;  %v2229_v50 = vld [vmem:[%s2783_s7 + $0x90] ss:$24 sps:$4 sm:$0xff] (!%p436_p2)  }
   0xd   : > { %s2792_s17 = smov (!%p492_p3, %s1893_s17), 7  ;;  %2089 = vmatprep.subr.bf16.mxu1 %v2212_v9  ;;  %v2226_v48 = vld [vmem:[%s2783_s7 + $0x60] ss:$24 sps:$4 sm:$0xff]   ;;  %v2234_v51 = vld [vmem:[%s2783_s7 + $0xc] ss:$24 sps:$4 sm:$0xff]  }
   0xe   : > { %s1894_s22 = sshll.u32 %s2792_s17, 2  ;;  %s1900_s27 = sshll.u32 %s2792_s17, 3 }
   0xf   : > { %s495_s25 = scalar_lea.vmem %s2776_s0, %s1894_s22  ;;  %2102 = vmatpush3.bf16.msra.mxu0 %v2200_v2  ;;  %s501_s26 = scalar_lea.vmem %s2777_s1, %s1894_s22 }
  0x10   : > { %v2202_v3 = vld [vmem:[%s495_s25] sm:$0xff]   ;;  %2103 = vmatprep.subr.bf16.mxu0 %v2201_v4  ;;  %v2204_v8 = vld [vmem:[%s495_s25 + $0x8] sm:$0xff]   ;;  %s2430_s15 = scalar_lea.vmem %s2778_s2, %s1894_s22  ;;  %2090 = vmatpush3.bf16.msra.mxu1 %v2212_v9  ;;  %s513_s25 = scalar_lea.vmem %s2790_s14, %s1900_s27 }
  0x11   : > { %2105 = vmatprep.mubr.msk.bf16.mxu0 %vm574_vm0, %v2202_v3  ;;  %v2215_v11 = vld [vmem:[%s501_s26] sm:$0xff]   ;;  %2091 = vmatprep.subr.bf16.mxu1 %v2214_v12  ;;  %v2217_v16 = vld [vmem:[%s501_s26 + $0x8] sm:$0xff]  }
  0x12   : > { %2093 = vmatprep.mubr.msk.bf16.mxu1 %vm574_vm0, %v2215_v11  ;;  %v2218_v14 = vld [vmem:[%s2430_s15] sm:$0xff]   ;;  %v2219_v21 = vld [vmem:[%s2430_s15 + $0x8] sm:$0xff]  }
  0x13   : > { %2104 = vmatpush3.bf16.msra.mxu0 %v2201_v4 }
  0x14   : > { %2109 = vmatprep.subr.bf16.mxu0 %v2203_v6  ;;  %2092 = vmatpush3.bf16.msra.mxu1 %v2214_v12  ;;  %v2237_v12 = vld [vmem:[%s2783_s7 + $0x3c] ss:$24 sps:$4 sm:$0xff]  }
  0x15   : > { %1087 = vmatprep.subr.bf16.mxu1 %v2222_v23  ;;  %v2244_v23 = vld [vmem:[%s2783_s7 + $0x10] ss:$24 sps:$4 sm:$0xff]  }
  0x16   : > { %2106 = vmatmul.mubr.msk.bf16.vlgmr.msra.gmra.mrb[0].mxu0 %vm574_vm0, %v2204_v8 }
  0x17   : > { %2110 = vmatpush3.bf16.msra.mxu0 %v2203_v6  ;;  %2125 = vmatprep.mubr.bf16.mxu0 %v2218_v14  ;;  %v2235_v14 = vld [vmem:[%s2783_s7 + $0x38] ss:$24 sps:$4 sm:$0xff]  }
  0x18   : > { %2111 = vmatprep.subr.bf16.mxu0 %v2205_v10  ;;  %2094 = vmatmul.mubr.msk.bf16.vlgmr.msra.gmra.mrb[0].mxu1 %vm574_vm0, %v2217_v16  ;;  %v2240_v16 = vld [vmem:[%s2783_s7 + $0x6c] ss:$24 sps:$4 sm:$0xff]  }
  0x19   : > { %1088 = vmatpush1.bf16.msra.mxu1 %v2220_v22  ;;  %1119 = vmatprep.mubr.bf16.mxu1 %v2304_v53  ;;  %v2246_v22 = vld [vmem:[%s2783_s7 + $0x14] ss:$24 sps:$4 sm:$0xff]  }
  0x1a   : > { %1089 = vmatprep.subr.bf16.mxu1 %v2225_v24  ;;  %v2249_v24 = vld [vmem:[%s2783_s7 + $0x44] ss:$24 sps:$4 sm:$0xff]  }
  0x1b   : > { %2112 = vmatpush3.bf16.msra.mxu0 %v2205_v10  ;;  %v2232_v10 = vld [vmem:[%s2783_s7 + $0x8] ss:$24 sps:$4 sm:$0xff]  }
  0x1c   : > { %2113 = vmatprep.subr.bf16.mxu0 %v2206_v13 }
  0x1d   : > { %1090 = vmatpush1.bf16.msra.mxu1 %v2223_v25  ;;  %v2247_v25 = vld [vmem:[%s2783_s7 + $0x40] ss:$24 sps:$4 sm:$0xff]  }
  0x1e   : > { %1091 = vmatprep.subr.bf16.mxu1 %v2228_v47 }
  0x1f   : > { %2114 = vmatpush3.bf16.msra.mxu0 %v2206_v13 }
  0x20   : > { %2115 = vmatprep.subr.bf16.mxu0 %v2207_v15 }
  0x21   : > { %1092 = vmatpush1.bf16.msra.mxu1 %v2226_v48  ;;  %v1276_v48 = vld [vmem:[%s2785_s9 + $0xb0] sm:$0xff] }
  0x22   : > { %1093 = vmatprep.subr.bf16.mxu1 %v2231_v49  ;;  %v1277_v49 = vld [vmem:[%s2785_s9 + $0xb8] sm:$0xff] }
  0x23   : > { %2116 = vmatpush3.bf16.msra.mxu0 %v2207_v15 }
  0x24   : > { %2117 = vmatprep.subr.bf16.mxu0 %v2209_v17 }
  0x25   : > { %1094 = vmatpush1.bf16.msra.mxu1 %v2229_v50  ;;  %v2151_v50 = vpack.c.bf16 %v1277_v49, %v1276_v48 }
  0x26   : > { %1140 = vmatprep.subr.bf16.mxu1 %v2234_v51  ;;  %v1260_v51 = vld [vmem:[%s2785_s9 + $0x30] sm:$0xff] }
  0x27   : > { %2118 = vmatpush3.bf16.msra.mxu0 %v2209_v17 }
  0x28   : > { %2119 = vmatprep.subr.bf16.mxu0 %v2211_v18 }
  0x2b   : > { %2120 = vmatpush3.bf16.msra.mxu0 %v2211_v18  ;;  %v2238_v18 = vld [vmem:[%s2783_s7 + $0x68] ss:$24 sps:$4 sm:$0xff]  }
  0x2c   : > { %2121 = vmatprep.subr.bf16.mxu0 %v2213_v19 }
  0x2f   : > { %2122 = vmatpush3.bf16.msra.mxu0 %v2213_v19 }
  0x30   : > { %2123 = vmatprep.subr.bf16.mxu0 %v2216_v20 }
  0x33   : > { %2124 = vmatpush3.bf16.msra.mxu0 %v2216_v20  ;;  %v2243_v20 = vld [vmem:[%s2783_s7 + $0x9c] ss:$24 sps:$4 sm:$0xff]  }
  0x36   : > { %2126 = vmatmul.mubr.bf16.vlgmr.msra.gmra.mrb[0].mxu0 %v2219_v21  ;;  %v2241_v21 = vld [vmem:[%s2783_s7 + $0x98] ss:$24 sps:$4 sm:$0xff]  }
  0xeb   : > { %v2095_v26 = vpop.f32.mrb[0].mxu1 }
  0xec   : > { %v615_v27 = vpop.f32.mrb[1].mxu1 }
  0xed   : > { %v2096_v28 = vpop.f32.mrb[2].mxu1 }
  0xee   : > { %v618_v29 = vpop.f32.mrb[3].mxu1 }
 0x109   : > { %v2127_v30 = vpop.f32.mrb[0].mxu0 }
 0x10a   : > { %v2179_v32 = vadd.f32 %v2127_v30, %v2095_v26  ;;  %v833_v33 = vpop.f32.mrb[1].mxu0  ;;  %v2252_v26 = vld [vmem:[%s2783_s7 + $0x74] ss:$24 sps:$4 sm:$0xff]  }
 0x10b   : > { %v2180_v34 = vadd.f32 %v833_v33, %v615_v27  ;;  %v2128_v35 = vpop.f32.mrb[2].mxu0  ;;  %v2250_v27 = vld [vmem:[%s2783_s7 + $0x70] ss:$24 sps:$4 sm:$0xff]   ;;  %v1254_v33 = vld [vmem:[%s2785_s9] sm:$0xff] }
 0x10c   : > { %v861_v36 = vadd.f32 %v2179_v32, %v1927_v31  ;;  %v2181_v37 = vadd.f32 %v2128_v35, %v2096_v28  ;;  %v836_v38 = vpop.f32.mrb[3].mxu0  ;;  %v2255_v28 = vld [vmem:[%s2783_s7 + $0xa4] ss:$24 sps:$4 sm:$0xff]   ;;  %v1271_v30 = vld [vmem:[%s2785_s9 + $0x88] sm:$0xff]  ;;  %v1272_v35 = vld [vmem:[%s2785_s9 + $0x90] sm:$0xff] }
 0x10d   : > { %v859_v39 = vadd.f32 %v2180_v34, %v1927_v31  ;;  %v2182_v40 = vadd.f32 %v836_v38, %v618_v29  ;;  %v1270_v29 = vld [vmem:[%s2785_s9 + $0x80] sm:$0xff]  ;;  %v1255_v34 = vld [vmem:[%s2785_s9 + $0x8] sm:$0xff] }
 0x10e   : > { %v869_v41 = vmul.f32 0.70710677, %v861_v36  ;;  %v862_v42 = vadd.f32 %v2181_v37, %v1927_v31  ;;  %v865_v55 = vmul.f32 0.5, %v861_v36  ;;  %v2139_v32 = vpack.c.bf16 %v1271_v30, %v1270_v29  ;;  %v1273_v36 = vld [vmem:[%s2785_s9 + $0x98] sm:$0xff] }
 0x10f   : > { %v867_v43 = vmul.f32 0.70710677, %v859_v39  ;;  %v860_v44 = vadd.f32 %v2182_v40, %v1927_v31  ;;  %v863_v58 = vmul.f32 0.5, %v859_v39  ;;  %v2253_v31 = vld [vmem:[%s2783_s7 + $0xa0] ss:$24 sps:$4 sm:$0xff]   ;;  %v2141_v37 = vpack.c.bf16 %v1255_v34, %v1254_v33  ;;  %v1256_v39 = vld [vmem:[%s2785_s9 + $0x10] sm:$0xff] }
 0x110   : > { %2272 = verf.f32 %v869_v41  ;;  %v870_v45 = vmul.f32 0.70710677, %v862_v42  ;;  %v866_v1 = vmul.f32 0.5, %v862_v42  ;;  %v2143_v38 = vpack.c.bf16 %v1273_v36, %v1272_v35  ;;  %v1257_v40 = vld [vmem:[%s2785_s9 + $0x18] sm:$0xff]  ;;  %v1274_v41 = vld [vmem:[%s2785_s9 + $0xa0] sm:$0xff]  ;;  %v1275_v42 = vld [vmem:[%s2785_s9 + $0xa8] sm:$0xff] }
 0x111   : > { %2274 = verf.f32 %v867_v43  ;;  %v868_v46 = vmul.f32 0.70710677, %v860_v44  ;;  %v864_v2 = vmul.f32 0.5, %v860_v44  ;;  %v2145_v43 = vpack.c.bf16 %v1257_v40, %v1256_v39 }
 0x112   : > { %2276 = verf.f32 %v870_v45  ;;  %v2147_v44 = vpack.c.bf16 %v1275_v42, %v1274_v41  ;;  %v1258_v45 = vld [vmem:[%s2785_s9 + $0x20] sm:$0xff] }
 0x113   : > { %2278 = verf.f32 %v868_v46  ;;  %v1259_v46 = vld [vmem:[%s2785_s9 + $0x28] sm:$0xff] }
 0x114   : > { %v2149_v47 = vpack.c.bf16 %v1259_v46, %v1258_v45 }
 0x11a   : > { %v2273_v52 = vpop.eup %2272 }
 0x11b   : > { %v2275_v54 = vpop.eup %2274  ;;  %v877_v56 = vadd.f32 1.0, %v2273_v52  ;;  %v1261_v52 = vld [vmem:[%s2785_s9 + $0x38] sm:$0xff] }
 0x11c   : > { %v2277_v57 = vpop.eup %2276  ;;  %v875_v59 = vadd.f32 1.0, %v2275_v54  ;;  %v1278_v54 = vld [vmem:[%s2785_s9 + $0xc0] sm:$0xff] }
 0x11d   : > { %v2279_v60 = vpop.eup %2278  ;;  %v881_v61 = vmul.f32 %v877_v56, %v865_v55  ;;  %v878_v62 = vadd.f32 1.0, %v2277_v57  ;;  %v1279_v55 = vld [vmem:[%s2785_s9 + $0xc8] sm:$0xff]  ;;  %v1262_v57 = vld [vmem:[%s2785_s9 + $0x40] sm:$0xff] }
 0x11e   : > { %v879_v63 = vmul.f32 %v875_v59, %v863_v58  ;;  %v876_v0 = vadd.f32 1.0, %v2279_v60  ;;  %v2155_v56 = vpack.c.bf16 %v1279_v55, %v1278_v54  ;;  %v1263_v58 = vld [vmem:[%s2785_s9 + $0x48] sm:$0xff]  ;;  %v1280_v60 = vld [vmem:[%s2785_s9 + $0xd0] sm:$0xff] }
 0x11f   : > { %891 = vrot.lane.b32.xlu1 %v881_v61, %s2305_s24  ;;  %v882_v3 = vmul.f32 %v878_v62, %v866_v1  ;;  %v2157_v59 = vpack.c.bf16 %v1263_v58, %v1262_v57 }
 0x120   : > { %887 = vrot.lane.b32.xlu0 %v879_v63, %s2305_s24  ;;  %v880_v4 = vmul.f32 %v876_v0, %v864_v2  ;;  %v1265_v0 = vld [vmem:[%s2785_s9 + $0x58] sm:$0xff]  ;;  %v1282_v2 = vld [vmem:[%s2785_s9 + $0xe0] sm:$0xff] }
 0x123   : > { %893 = vrot.lane.b32.xlu1 %v882_v3, %s2305_s24 }
 0x124   : > { %889 = vrot.lane.b32.xlu0 %v880_v4, %s2305_s24 }
 0x191   : > { %v892_v6 = vpop.permute.xlu1 %891 }
 0x192   : > { %v888_v5 = vpop.permute.xlu0 %887  ;;  %v901_v17 = vmul.f32 %v892_v6, %v881_v61  ;;  %v1281_v61 = vld [vmem:[%s2785_s9 + $0xd8] sm:$0xff]  ;;  %v1267_v6 = vld [vmem:[%s2785_s9 + $0x68] sm:$0xff] }
 0x193   : > { %v899_v8 = vmul.f32 %v888_v5, %v879_v63  ;;  %v2159_v62 = vpack.c.bf16 %v1281_v61, %v1280_v60  ;;  %v1264_v63 = vld [vmem:[%s2785_s9 + $0x50] sm:$0xff]  ;;  %v1266_v5 = vld [vmem:[%s2785_s9 + $0x60] sm:$0xff] }
 0x194   : > { %v2161_v1 = vpack.c.bf16 %v1265_v0, %v1264_v63 }
 0x195   : > { %v894_v13 = vpop.permute.xlu1 %893 }
 0x196   : > { %v890_v7 = vpop.permute.xlu0 %889  ;;  %v902_v15 = vmul.f32 %v894_v13, %v882_v3  ;;  %v1283_v3 = vld [vmem:[%s2785_s9 + $0xe8] sm:$0xff] }
 0x197   : > { %v900_v9 = vmul.f32 %v890_v7, %v880_v4  ;;  %v2163_v4 = vpack.c.bf16 %v1283_v3, %v1282_v2  ;;  %v2165_v7 = vpack.c.bf16 %v1267_v6, %v1266_v5 }
 0x198   : > { %v904_v19 = vpack.c.bf16 %v902_v15, %v901_v17  ;;  %v931_v15 = vlaneseq }
 0x199   : > { %v903_v11 = vpack.c.bf16 %v900_v9, %v899_v8  ;;  %v1284_v8 = vld [vmem:[%s2785_s9 + $0xf0] sm:$0xff]  ;;  %v1285_v9 = vld [vmem:[%s2785_s9 + $0xf8] sm:$0xff] }
 0x19b   : > { %1952 = vmatmul.mubr.msk.bf16.vlgmr.msra.gmra.mrb[4].mxu1 %vm574_vm0, %v903_v11 }
 0x19c   : > { %1141 = vmatpush1.bf16.msra.mxu1 %v2232_v10  ;;  %1129 = vmatprep.mubr.bf16.mxu1 %v2304_v53  ;;  %v2167_v10 = vpack.c.bf16 %v1285_v9, %v1284_v8 }
 0x19d   : > { %1142 = vmatprep.subr.bf16.mxu1 %v2237_v12  ;;  %v1269_v12 = vld [vmem:[%s2785_s9 + $0x78] sm:$0xff] }
 0x1a0   : > { %1143 = vmatpush1.bf16.msra.mxu1 %v2235_v14 }
 0x1a1   : > { %1144 = vmatprep.subr.bf16.mxu1 %v2240_v16 }
 0x1a3   : > { %1953 = vmatmul.mubr.msk.bf16.gmra.mrb[8].mxu1 %vm574_vm0, %v904_v19 }
 0x1a4   : > { %1145 = vmatpush1.bf16.msra.mxu1 %v2238_v18  ;;  %1172 = vmatprep.mubr.bf16.mxu1 %v2304_v53 }
 0x1a5   : > { %1146 = vmatprep.subr.bf16.mxu1 %v2243_v20 }
 0x1a8   : > { %1147 = vmatpush1.bf16.msra.mxu1 %v2241_v21 }
 0x1a9   : > { %1193 = vmatprep.subr.bf16.mxu1 %v2246_v22 }
 0x1ab   : > { %1954 = vmatmul.mubr.msk.bf16.vlgmr.msra.gmra.mrb[12].mxu1 %vm574_vm0, %v903_v11 }
 0x1ac   : > { %1194 = vmatpush1.bf16.msra.mxu1 %v2244_v23  ;;  %1182 = vmatprep.mubr.bf16.mxu1 %v2304_v53 }
 0x1ad   : > { %1195 = vmatprep.subr.bf16.mxu1 %v2249_v24  ;;  %v2648_v24 = vld [vmem:[%s2784_s8] sm:$0x3f] }
 0x1b0   : > { %1196 = vmatpush1.bf16.msra.mxu1 %v2247_v25 }
 0x1b1   : > { %1197 = vmatprep.subr.bf16.mxu1 %v2252_v26 }
 0x1b3   : > { %1955 = vmatmul.mubr.msk.bf16.gmra.mrb[16].mxu1 %vm574_vm0, %v904_v19 }
 0x1b4   : > { %1198 = vmatpush1.bf16.msra.mxu1 %v2250_v27  ;;  %1225 = vmatprep.mubr.bf16.mxu1 %v2304_v53 }
 0x1b5   : > { %1199 = vmatprep.subr.bf16.mxu1 %v2255_v28 }
 0x1b8   : > { %1200 = vmatpush1.bf16.msra.mxu1 %v2253_v31 }
 0x1b9   : > { %2140 = vmatprep.subr.bf16.mxu1 %v2139_v32 }
 0x1bb   : > { %1956 = vmatmul.mubr.msk.bf16.vlgmr.msra.gmra.mrb[20].mxu1 %vm574_vm0, %v903_v11  ;;  %v1268_v11 = vld [vmem:[%s2785_s9 + $0x70] sm:$0xff] }
 0x1bc   : > { %1235 = vmatprep.mubr.bf16.mxu1 %v2304_v53  ;;  %2142 = vmatpush3.bf16.msra.mxu1 %v2141_v37  ;;  %v2153_v53 = vpack.c.bf16 %v1261_v52, %v1260_v51  ;;  %v2169_v13 = vpack.c.bf16 %v1269_v12, %v1268_v11 }
 0x1bd   : > { %2144 = vmatprep.subr.bf16.mxu1 %v2143_v38 }
 0x1c0   : > { %2146 = vmatpush3.bf16.msra.mxu1 %v2145_v43 }
 0x1c1   : > { %2148 = vmatprep.subr.bf16.mxu1 %v2147_v44 }
 0x1c3   : > { %1957 = vmatmul.mubr.msk.bf16.gmra.mrb[24].mxu1 %vm574_vm0, %v904_v19  ;;  %v2641_v19 = vshrl.u32 %v931_v15, 7 }
 0x1c4   : > { %2150 = vmatpush3.bf16.msra.mxu1 %v2149_v47 }
 0x1c5   : > { %2152 = vmatprep.subr.bf16.mxu1 %v2151_v50  ;;  %v933_v21 = vsub.s32 0, %v2641_v19  ;;  %v941_v23 = vsub.s32 2, %v2641_v19  ;;  %v937_v25 = vsub.s32 1, %v2641_v19  ;;  %v945_v27 = vsub.s32 3, %v2641_v19 }
 0x1c7   : > { %v934_v29 = vrot.slane %v2648_v24, %v933_v21  ;;  %v942_v30 = vrot.slane %v2648_v24, %v941_v23  ;;  %v938_v31 = vrot.slane %v2648_v24, %v937_v25  ;;  %v946_v32 = vrot.slane %v2648_v24, %v945_v27  ;;  %v1396_v27 = vld [vmem:[%s2786_s10] sm:$0xff] }
 0x1c8   : > { %2154 = vmatpush3.bf16.msra.mxu1 %v2153_v53 }
 0x1c9   : > { %2156 = vmatprep.subr.bf16.mxu1 %v2155_v56 }
 0x1cc   : > { %2158 = vmatpush3.bf16.msra.mxu1 %v2157_v59 }
 0x1cd   : > { %2160 = vmatprep.subr.bf16.mxu1 %v2159_v62 }
 0x1d0   : > { %2162 = vmatpush3.bf16.msra.mxu1 %v2161_v1 }
 0x1d1   : > { %2164 = vmatprep.subr.bf16.mxu1 %v2163_v4 }
 0x1d4   : > { %2166 = vmatpush3.bf16.msra.mxu1 %v2165_v7 }
 0x1d5   : > { %2168 = vmatprep.subr.bf16.mxu1 %v2167_v10 }
 0x1d8   : > { %2170 = vmatpush3.bf16.msra.mxu1 %v2169_v13 }
 0x26e   : > { %v1121_v14 = vpop.f32.mrb[4].mxu1 }
 0x26f   : > { %v1123_v16 = vpop.f32.mrb[5].mxu1  ;;  %v1122_v34 = vadd.f32 %v1121_v14, %v934_v29 }
 0x270   : > { %v1125_v17 = vpop.f32.mrb[6].mxu1  ;;  %v1124_v37 = vadd.f32 %v1123_v16, %v938_v31 }
 0x271   : > { %v1127_v18 = vpop.f32.mrb[7].mxu1  ;;  %v1126_v40 = vadd.f32 %v1125_v17, %v934_v29 }
 0x272   : > { %v1128_v44 = vadd.f32 %v1127_v18, %v938_v31 }
 0x276   : > { %v1131_v20 = vpop.f32.mrb[8].mxu1 }
 0x277   : > { %v1133_v22 = vpop.f32.mrb[9].mxu1  ;;  %v1132_v50 = vadd.f32 %v1131_v20, %v934_v29 }
 0x278   : > { %v1135_v26 = vpop.f32.mrb[10].mxu1  ;;  %v1134_v53 = vadd.f32 %v1133_v22, %v938_v31 }
 0x279   : > { %v1137_v28 = vpop.f32.mrb[11].mxu1  ;;  %v1136_v56 = vadd.f32 %v1135_v26, %v934_v29 }
 0x27a   : > { %v1138_v60 = vadd.f32 %v1137_v28, %v938_v31  ;;  %v1397_v28 = vld [vmem:[%s2786_s10 + $0x8] sm:$0xff] }
 0x27b   : > { %v2171_v29 = vpack.c.bf16 %v1397_v28, %v1396_v27  ;;  %v949_v27 = vsub.s32 4, %v2641_v19  ;;  %v953_v28 = vsub.s32 5, %v2641_v19 }
 0x27d   : > { %2172 = vmatprep.subr.bf16.mxu0 %v2171_v29 }
 0x27e   : > { %v1174_v33 = vpop.f32.mrb[12].mxu1  ;;  %2174 = vmatpush3.bf16.msra.mxu0 %v2171_v29  ;;  %v950_v29 = vrot.slane %v2648_v24, %v949_v27 }
 0x27f   : > { %v1175_v35 = vadd.f32 %v1174_v33, %v942_v30  ;;  %v1176_v36 = vpop.f32.mrb[13].mxu1 }
 0x280   : > { %v1177_v38 = vadd.f32 %v1176_v36, %v946_v32  ;;  %v1178_v39 = vpop.f32.mrb[14].mxu1 }
 0x281   : > { %v1246_v41 = vmul.f32 %v1175_v35, %v1122_v34  ;;  %v1179_v42 = vadd.f32 %v1178_v39, %v942_v30  ;;  %v1180_v43 = vpop.f32.mrb[15].mxu1 }
 0x282   : > { %v1247_v45 = vmul.f32 %v1177_v38, %v1124_v37  ;;  %v1181_v46 = vadd.f32 %v1180_v43, %v946_v32 }
 0x283   : > { %v1248_v47 = vmul.f32 %v1179_v42, %v1126_v40 }
 0x284   : > { %v1249_v48 = vmul.f32 %v1181_v46, %v1128_v44  ;;  %1350 = vmatprep.mubr.f32.mxu1 %v1247_v45  ;;  %v1504_v46 = vld [vmem:[%s2787_s11 + $0x8] sm:$0xff] }
 0x285   : > { %1351 = vmatmul.mubr.f32.vlgmr.msra.gmra.mrb[28].mxu1 %v1246_v41 }
 0x286   : > { %v1184_v49 = vpop.f32.mrb[16].mxu1  ;;  %1355 = vmatprep.mubr.f32.mxu1 %v1249_v48 }
 0x287   : > { %v1185_v51 = vadd.f32 %v1184_v49, %v942_v30  ;;  %v1186_v52 = vpop.f32.mrb[17].mxu1  ;;  %v1503_v49 = vld [vmem:[%s2787_s11] sm:$0xff] }
 0x288   : > { %v1187_v54 = vadd.f32 %v1186_v52, %v946_v32  ;;  %v1188_v55 = vpop.f32.mrb[18].mxu1  ;;  %v2306_v52 = vmov 0.0  }
 0x289   : > { %v1250_v57 = vmul.f32 %v1185_v51, %v1132_v50  ;;  %v1189_v58 = vadd.f32 %v1188_v55, %v942_v30  ;;  %v1190_v59 = vpop.f32.mrb[19].mxu1  ;;  %1356 = vmatmul.mubr.f32.gmra.mrb[30].mxu1 %v1248_v47  ;;  %v1506_v47 = vld [vmem:[%s2787_s11 + $0x18] sm:$0xff]  ;;  %v1505_v50 = vld [vmem:[%s2787_s11 + $0x10] sm:$0xff] }
 0x28a   : > { %v1251_v61 = vmul.f32 %v1187_v54, %v1134_v53  ;;  %v1191_v62 = vadd.f32 %v1190_v59, %v946_v32  ;;  %v2175_v48 = vpack.c.bf16 %v1506_v47, %v1504_v46  ;;  %v2177_v51 = vpack.c.bf16 %v1505_v50, %v1503_v49  ;;  %v2256_v53 = vld [vmem:[%s2788_s12 + $0x40] sm:$0xff]  }
 0x28b   : > { %v1252_v63 = vmul.f32 %v1189_v58, %v1136_v56  ;;  %v2257_v59 = vld [vmem:[%s2788_s12] sm:$0xff]  }
 0x28c   : > { %v1253_v0 = vmul.f32 %v1191_v62, %v1138_v60  ;;  %1360 = vmatprep.mubr.f32.mxu1 %v1251_v61  ;;  %2176 = vmatprep.subr.bf16.mxu0 %v2175_v48  ;;  %v2258_v61 = vld [vmem:[%s2788_s12 + $0x48] sm:$0xff]  }
 0x28d   : > { %1361 = vmatmul.mubr.f32.gmra.mrb[32].mxu1 %v1250_v57 }
 0x28e   : > { %v2656_v1 = vpop.f32.mrb[20].mxu1  ;;  %1365 = vmatprep.mubr.f32.mxu1 %v1253_v0 }
 0x28f   : > { %v2658_v2 = vpop.f32.mrb[21].mxu1 }
 0x290   : > { %v2660_v3 = vpop.f32.mrb[22].mxu1 }
 0x291   : > { %v2662_v4 = vpop.f32.mrb[23].mxu1  ;;  %1366 = vmatmul.mubr.f32.gmra.mrb[34].mxu1 %v1252_v63  ;;  %v2259_v63 = vld [vmem:[%s2788_s12 + $0x8] sm:$0xff]  }
 0x296   : > { %v2664_v5 = vpop.f32.mrb[24].mxu1 }
 0x297   : > { %v2666_v6 = vpop.f32.mrb[25].mxu1 }
 0x298   : > { %v2668_v7 = vpop.f32.mrb[26].mxu1 }
 0x299   : > { %v2670_v8 = vpop.f32.mrb[27].mxu1 }
 0x358   : > { %v2039_v9 = vpop.f32.mrb[28].mxu1 }
 0x359   : > { %v2040_v10 = vpop.f32.mrb[29].mxu1 }
 0x35a   : > { %v2041_v11 = vadd.f32 %v2040_v10, %v2039_v9  ;;  %v2260_v9 = vld [vmem:[%s2788_s12 + $0x50] sm:$0xff]  }
 0x35c   : > { %v2042_v12 = vpop.f32.mrb[30].mxu1  ;;  %v1372_v13 = vsel %vm1371_vm1, %v2041_v11, -inf }
 0x35d   : > { %v2043_v14 = vpop.f32.mrb[31].mxu1  ;;  %1373 = vmax.xlane.f32.xlu0 %v1372_v13  ;;  %v2262_v13 = vld [vmem:[%s2788_s12 + $0x58] sm:$0xff]  }
 0x35e   : > { %v2044_v15 = vadd.f32 %v2043_v14, %v2042_v12 }
 0x360   : > { %v2045_v16 = vpop.f32.mrb[32].mxu1  ;;  %v1375_v17 = vsel %vm1371_vm1, %v2044_v15, -inf }
 0x361   : > { %v2046_v18 = vpop.f32.mrb[33].mxu1  ;;  %1376 = vmax.xlane.f32.xlu1 %v1375_v17  ;;  %v2264_v17 = vld [vmem:[%s2788_s12 + $0x60] sm:$0xff]  }
 0x362   : > { %v2047_v20 = vadd.f32 %v2046_v18, %v2045_v16  ;;  %v2265_v18 = vld [vmem:[%s2788_s12 + $0x20] sm:$0xff]  }
 0x364   : > { %v2048_v21 = vpop.f32.mrb[34].mxu1  ;;  %v1378_v22 = vsel %vm1371_vm1, %v2047_v20, -inf }
 0x365   : > { %v2049_v23 = vpop.f32.mrb[35].mxu1  ;;  %1379 = vmax.xlane.f32.xlu0 %v1378_v22  ;;  %v2268_v22 = vld [vmem:[%s2788_s12 + $0x70] sm:$0xff]  }
 0x366   : > { %v2050_v25 = vadd.f32 %v2049_v23, %v2048_v21  ;;  %v2267_v21 = vld [vmem:[%s2788_s12 + $0x28] sm:$0xff]   ;;  %v2269_v23 = vld [vmem:[%s2788_s12 + $0x30] sm:$0xff]  }
 0x368   : > { %v1381_v26 = vsel %vm1371_vm1, %v2050_v25, -inf }
 0x369   : > { %1382 = vmax.xlane.f32.xlu0 %v1381_v26  ;;  %v2271_v26 = vld [vmem:[%s2788_s12 + $0x38] sm:$0xff]  }
 0x3ea   : > { %v1374_v30 = vpop.xlane.xlu0 %1373 }
 0x3eb   : > { %v1384_v31 = vsub.f32 %v2041_v11, %v1374_v30  ;;  %v2261_v11 = vld [vmem:[%s2788_s12 + $0x10] sm:$0xff]   ;;  %v954_v30 = vrot.slane %v2648_v24, %v953_v28 }
 0x3ed   : > { %v1388_v32 = vmul.f32 1.442695, %v1384_v31  ;;  %v1228_v31 = vadd.f32 %v2656_v1, %v950_v29  ;;  %v1240_v24 = vadd.f32 %v2666_v6, %v954_v30 }
 0x3ee   : > { %v1377_v33 = vpop.xlane.xlu1 %1376 }
 0x3ef   : > { %2280 = vpow2.f32 %v1388_v32  ;;  %v1385_v34 = vsub.f32 %v2044_v15, %v1377_v33  ;;  %v2263_v15 = vld [vmem:[%s2788_s12 + $0x18] sm:$0xff]   ;;  %v1230_v32 = vadd.f32 %v2658_v2, %v954_v30 }
 0x3f1   : > { %v1390_v35 = vmul.f32 1.442695, %v1385_v34 }
 0x3f2   : > { %v1380_v36 = vpop.xlane.xlu0 %1379 }
 0x3f3   : > { %2282 = vpow2.f32 %v1390_v35  ;;  %v1386_v37 = vsub.f32 %v2047_v20, %v1380_v36  ;;  %v2266_v20 = vld [vmem:[%s2788_s12 + $0x68] sm:$0xff]  }
 0x3f5   : > { %v1392_v38 = vmul.f32 1.442695, %v1386_v37  ;;  %v1232_v37 = vadd.f32 %v2660_v3, %v950_v29  ;;  %v1242_v3 = vadd.f32 %v2668_v7, %v950_v29 }
 0x3f6   : > { %v1383_v39 = vpop.xlane.xlu0 %1382 }
 0x3f7   : > { %2284 = vpow2.f32 %v1392_v38  ;;  %v1387_v40 = vsub.f32 %v2050_v25, %v1383_v39  ;;  %v2270_v25 = vld [vmem:[%s2788_s12 + $0x78] sm:$0xff]   ;;  %v1234_v38 = vadd.f32 %v2662_v4, %v954_v30  ;;  %v1244_v4 = vadd.f32 %v2670_v8, %v954_v30 }
 0x3f9   : > { %v2281_v41 = vpop.eup %2280  ;;  %v1394_v42 = vmul.f32 1.442695, %v1387_v40 }
 0x3fa   : > { %2133 = vmatprep.mubr.msk.f32.mxu0 %vm1371_vm1, %v2281_v41 }
 0x3fb   : > { %2286 = vpow2.f32 %v1394_v42  ;;  %v1238_v42 = vadd.f32 %v2664_v5, %v950_v29 }
 0x3fd   : > { %v2283_v43 = vpop.eup %2282 }
 0x3fe   : > { %2134 = vmatmul.mubr.msk.f32.vlgmr.msra.gmra.mrb[4].mxu0 %vm1371_vm1, %v2283_v43 }
 0x3ff   : > { %2178 = vmatpush1.bf16.msra.mxu0 %v2177_v51 }
 0x400   : > { %2057 = vmatprep.subr.bf16.mxu0 %v2256_v53 }
 0x401   : > { %v2285_v44 = vpop.eup %2284 }
 0x402   : > { %2136 = vmatprep.mubr.msk.f32.mxu0 %vm1371_vm1, %v2285_v44 }
 0x405   : > { %v2287_v45 = vpop.eup %2286 }
 0x406   : > { %2137 = vmatmul.mubr.msk.f32.gmra.mrb[6].mxu0 %vm1371_vm1, %v2287_v45 }
 0x407   : > { %1583 = vmatprep.mubr.f32.mxu0 %v2306_v52 }
 0x4d1   : > { %v2135_v54 = vpop.f32.mrb[4].mxu0 }
 0x4d2   : > { %v1476_v55 = vpop.f32.mrb[5].mxu0 }
 0x4d3   : > { %2288 = vrcp.f32 %v1476_v55 }
 0x4d4   : > { %2290 = vrcp.f32 %v2135_v54 }
 0x4d9   : > { %v2138_v56 = vpop.f32.mrb[6].mxu0 }
 0x4da   : > { %v1486_v57 = vpop.f32.mrb[7].mxu0 }
 0x4db   : > { %2292 = vrcp.f32 %v1486_v57 }
 0x4dc   : > { %2294 = vrcp.f32 %v2138_v56 }
 0x4dd   : > { %v2289_v58 = vpop.eup %2288 }
 0x4de   : > { %v1499_v60 = vmul.f32 %v2289_v58, %v2281_v41  ;;  %v2291_v62 = vpop.eup %2290 }
 0x4df   : > { %v1500_v0 = vmul.f32 %v2291_v62, %v2283_v43 }
 0x4e0   : > { %1962 = vmatmul.mubr.msk.f32.vlgmr.msra.gmra.mrb[8].mxu0 %vm1371_vm1, %v1499_v60 }
 0x4e1   : > { %1589 = vmatprep.mubr.f32.mxu0 %v2306_v52  ;;  %2058 = vmatpush3.bf16.msra.mxu0 %v2257_v59 }
 0x4e2   : > { %2059 = vmatprep.subr.bf16.mxu0 %v2258_v61 }
 0x4e4   : > { %1963 = vmatmul.mubr.msk.f32.gmra.mrb[10].mxu0 %vm1371_vm1, %v1500_v0 }
 0x4e5   : > { %v2293_v10 = vpop.eup %2292  ;;  %1595 = vmatprep.mubr.f32.mxu0 %v2306_v52  ;;  %2060 = vmatpush3.bf16.msra.mxu0 %v2259_v63 }
 0x4e6   : > { %v1501_v12 = vmul.f32 %v2293_v10, %v2285_v44  ;;  %2061 = vmatprep.subr.bf16.mxu0 %v2260_v9  ;;  %v2295_v14 = vpop.eup %2294 }
 0x4e7   : > { %v1502_v16 = vmul.f32 %v2295_v14, %v2287_v45 }
 0x4e8   : > { %1964 = vmatmul.mubr.msk.f32.gmra.mrb[12].mxu0 %vm1371_vm1, %v1501_v12 }
 0x4e9   : > { %1601 = vmatprep.mubr.f32.mxu0 %v2306_v52  ;;  %2062 = vmatpush3.bf16.msra.mxu0 %v2261_v11  ;;  %v1966_v52 = vld [vmem:[%s2789_s13] ss:$0 sm:$0xff] }
 0x4ea   : > { %2063 = vmatprep.subr.bf16.mxu0 %v2262_v13 }
 0x4ec   : > { %1965 = vmatmul.mubr.msk.f32.gmra.mrb[14].mxu0 %vm1371_vm1, %v1502_v16 }
 0x4ed   : > { %2064 = vmatpush3.bf16.msra.mxu0 %v2263_v15 }
 0x4ee   : > { %2065 = vmatprep.subr.bf16.mxu0 %v2264_v17 }
 0x4f1   : > { %2066 = vmatpush3.bf16.msra.mxu0 %v2265_v18 }
 0x4f2   : > { %2067 = vmatprep.subr.bf16.mxu0 %v2266_v20 }
 0x4f5   : > { %2068 = vmatpush3.bf16.msra.mxu0 %v2267_v21 }
 0x4f6   : > { %2069 = vmatprep.subr.bf16.mxu0 %v2268_v22 }
 0x4f9   : > { %2070 = vmatpush3.bf16.msra.mxu0 %v2269_v23 }
 0x4fa   : > { %2071 = vmatprep.subr.bf16.mxu0 %v2270_v25 }
 0x4fd   : > { %2072 = vmatpush3.bf16.msra.mxu0 %v2271_v26 }
 0x5b3   : > { %v1585_v33 = vpop.f32.mrb[8].mxu0 }
 0x5b4   : > { %v1608_v34 = vmul.f32 %v1585_v33, %v1228_v31  ;;  %v1587_v35 = vpop.f32.mrb[9].mxu0 }
 0x5b5   : > { %v1609_v36 = vmul.f32 %v1587_v35, %v1230_v32 }
 0x5b7   : > { %v1591_v39 = vpop.f32.mrb[10].mxu0 }
 0x5b8   : > { %v1610_v40 = vmul.f32 %v1591_v39, %v1232_v37  ;;  %v1593_v41 = vpop.f32.mrb[11].mxu0 }
 0x5b9   : > { %v1611_v19 = vmul.f32 %v1593_v41, %v1234_v38 }
 0x5ba   : > { %v1616_v43 = vpack.c.bf16 %v1610_v40, %v1608_v34 }
 0x5bb   : > { %v1617_v1 = vpack.c.bf16 %v1611_v19, %v1609_v36  ;;  %v1597_v44 = vpop.f32.mrb[12].mxu0 }
 0x5bc   : > { %v1612_v2 = vmul.f32 %v1597_v44, %v1238_v42  ;;  %v1599_v45 = vpop.f32.mrb[13].mxu0 }
 0x5bd   : > { %v1613_v46 = vmul.f32 %v1599_v45, %v1240_v24  ;;  %1787 = vmatprep.mubr.bf16.mxu0 %v1617_v1 }
 0x5be   : > { %1788 = vmatmul.mubr.bf16.vlgmr.msra.gmra.mrb[16].mxu0 %v1616_v43 }
 0x5bf   : > { %v1603_v47 = vpop.f32.mrb[14].mxu0 }
 0x5c0   : > { %v1614_v48 = vmul.f32 %v1603_v47, %v1242_v3  ;;  %v1605_v49 = vpop.f32.mrb[15].mxu0 }
 0x5c1   : > { %v1615_v50 = vmul.f32 %v1605_v49, %v1244_v4 }
 0x5c2   : > { %v1618_v5 = vpack.c.bf16 %v1614_v48, %v1612_v2 }
 0x5c3   : > { %v1619_v51 = vpack.c.bf16 %v1615_v50, %v1613_v46 }
 0x5c5   : > { %1795 = vmatprep.mubr.bf16.mxu0 %v1619_v51 }
 0x5c6   : > { %1796 = vmatmul.mubr.bf16.gmra.mrb[20].mxu0 %v1618_v5 }
 0x691   : > { %v2073_v6 = vpop.f32.mrb[16].mxu0 }
 0x692   : > { %v2074_v53 = vpop.f32.mrb[17].mxu0 }
 0x693   : > { %v2075_v54 = vadd.f32 %v2074_v53, %v2073_v6  ;;  %v2076_v7 = vpop.f32.mrb[18].mxu0 }
 0x694   : > { %v2077_v8 = vpop.f32.mrb[19].mxu0 }
 0x695   : > { %v1790_v55 = vadd.f32 %v2075_v54, %v1966_v52  ;;  %v2078_v56 = vadd.f32 %v2077_v8, %v2076_v7 }
 0x697   : > { %1804 = vst.msk [vmem:[%s513_s25] sm:$0xff] %vm574_vm0, %v1790_v55  ;;  %v1793_v57 = vadd.f32 %v2078_v56, %v1966_v52 }
 0x699   : > { %1805 = vst.msk [vmem:[%s513_s25 + $0x8] sm:$0xff] %vm574_vm0, %v1793_v57  ;;  %v2079_v58 = vpop.f32.mrb[20].mxu0 }
 0x69a   : > { %v2080_v59 = vpop.f32.mrb[21].mxu0 }
 0x69b   : > { %v2081_v60 = vadd.f32 %v2080_v59, %v2079_v58  ;;  %v2082_v61 = vpop.f32.mrb[22].mxu0 }
 0x69c   : > { %v2083_v62 = vpop.f32.mrb[23].mxu0 }
 0x69d   : > { %v1798_v63 = vadd.f32 %v2081_v60, %v1966_v52  ;;  %v2084_v0 = vadd.f32 %v2083_v62, %v2082_v61 }
 0x69f   : > { %1806 = vst.msk [vmem:[%s513_s25 + $0x10] sm:$0xff] %vm574_vm0, %v1798_v63  ;;  %v1801_v9 = vadd.f32 %v2084_v0, %v1966_v52 }
 0x6a1   : > { %1807 = vst.msk [vmem:[%s513_s25 + $0x18] sm:$0xff] %vm574_vm0, %v1801_v9 }
 0x6a2 PF: > { %s24_s29 = sadd.s32 1, %s2302_s29  }
 0x6a3   : > { %p21_p4 = scmp.ge.s32.totalorder %s24_s29, 4  }
 0x6a5   :  { %23 = sbr.rel (!%p21_p4) target bundleno = 1 (0x1), region = 112 }

// kernel: is_stable_gnn_forward.19
= control target key start
LH: loop header
LB: loop body
LE: loop exit
PB: predicated region body
PF: predicated region fallthrough
CT: control target
= control target key end

     0   :  { %s1007_s21 = smov 0   ;;  %s1132_s0 = inlined_call_operand.vmem [shape: f32[32,64], index: 0, kind: input, shape index: {}]   ;;  %s1133_s1 = inlined_call_operand.vmem [shape: f32[32,64], index: 1, kind: input, shape index: {}]   ;;  %s1134_s2 = inlined_call_operand.vmem [shape: f32[1,64], index: 2, kind: input, shape index: {}]   ;;  %s1135_s3 = inlined_call_operand.vmem [shape: f32[1,64], index: 3, kind: input, shape index: {}]   ;;  %s1136_s4 = inlined_call_operand.vmem [shape: bf16[4,64,64], index: 4, kind: input, shape index: {}]   ;;  %s1137_s5 = inlined_call_operand.vmem [shape: f32[4,1,64], index: 5, kind: input, shape index: {}]   ;;  %s1138_s6 = inlined_call_operand.vmem [shape: f32[32,64], index: 6, kind: output, shape index: {}]  }
   0x1 LB: > { %s782_s22 = sadd.s32 4294967295, %s968_s21   ;;  %p786_p0 = scmp.ge.s32.totalorder %s968_s21, 1  ;;  %s968_s21 = sphi %s1007_s21, %s16_s21  }
   0x2   : > { %p224_p1 = scmp.lt.s32.totalorder %s968_s21, 3 }
   0x4   : > { %p225_p2 = pnand %p786_p0, %p224_p1 }
   0x5   : > { %s787_s23 = sshll.u32 (!%p225_p2), %s782_s22, 1  ;;  %vm280_vm0 = vcmask (!%p225_p2), 523264   ;;  %v926_v14 = vld [vmem:[%s1136_s4] sm:$0xff] (!%p225_p2)   ;;  %v970_v15 = vmov (!%p225_p2), 0.0   ;;  %v927_v16 = vld [vmem:[%s1136_s4 + $0x8] sm:$0xff] (!%p225_p2)   ;;  %v928_v17 = vld [vmem:[%s1136_s4 + $0x10] sm:$0xff] (!%p225_p2)  }
   0x6   : > { %228 = sbr.rel (%p225_p2) target bundleno = 1277 (0x4fd), region = 44  ;;  %p260_p3 = scmp.lt.s32.totalorder (!%p225_p2), %s787_s23, 3  ;;  %868 = vmatprep.subr.bf16.mxu0 (!%p225_p2), %v970_v15  ;;  %880 = vmatprep.subr.bf16.mxu1 (!%p225_p2), %v970_v15  ;;  %vm971_vm1 = vmmov (!%p225_p2), 0   ;;  %v929_v18 = vld [vmem:[%s1136_s4 + $0x18] sm:$0xff] (!%p225_p2)   ;;  %v793_v26 = vld [vmem:[%s1134_s2] ss:$0 sm:$0xff] (!%p225_p2) }
   0x7   : > { %869 = vmatpush3.bf16.msra.mxu0 (!%p225_p2), %v926_v14  ;;  %876 = vmatprep.mubr.msk.bf16.mxu0 (!%p225_p2), %vm971_vm1, %v970_v15  ;;  %v794_v30 = vld [vmem:[%s1135_s3] ss:$0 sm:$0xff] (!%p225_p2)  ;;  %v931_v41 = vld [vmem:[%s1136_s4 + $0x28] sm:$0xff] (!%p225_p2)   ;;  %v932_v42 = vld [vmem:[%s1136_s4 + $0x30] sm:$0xff] (!%p225_p2)  }
   0x8   : > { %870 = vmatprep.subr.bf16.mxu0 (!%p225_p2), %v970_v15  ;;  %888 = vmatprep.mubr.msk.bf16.mxu1 (!%p225_p2), %vm971_vm1, %v970_v15  ;;  %v930_v40 = vld [vmem:[%s1136_s4 + $0x20] sm:$0xff] (!%p225_p2)   ;;  %v933_v43 = vld [vmem:[%s1136_s4 + $0x38] sm:$0xff] (!%p225_p2)   ;;  %v935_v63 = vld [vmem:[%s1136_s4 + $0x48] sm:$0xff] (!%p225_p2)  }
   0x9   : > { %881 = vmatpush3.bf16.msra.mxu1 (!%p225_p2), %v930_v40  ;;  %v795_v44 = vld [vmem:[%s1137_s5] ss:$0 sm:$0xff] (!%p225_p2) }
   0xa   : > { %882 = vmatprep.subr.bf16.mxu1 (!%p225_p2), %v970_v15  ;;  %v934_v62 = vld [vmem:[%s1136_s4 + $0x40] sm:$0xff] (!%p225_p2)  }
   0xb   : > { %871 = vmatpush3.bf16.msra.mxu0 (!%p225_p2), %v927_v16 }
   0xc   : > { %872 = vmatprep.subr.bf16.mxu0 (!%p225_p2), %v970_v15 }
   0xd   : > { %s1140_s23 = smov (!%p260_p3, %s787_s23), 3  ;;  %883 = vmatpush3.bf16.msra.mxu1 %v931_v41 }
   0xe   : > { %s1015_s24 = sshll.u32 %s1140_s23, 3  ;;  %884 = vmatprep.subr.bf16.mxu1 %v970_v15 }
   0xf   : > { %s263_s27 = scalar_lea.vmem %s1132_s0, %s1015_s24  ;;  %873 = vmatpush3.bf16.msra.mxu0 %v928_v17  ;;  %s269_s18 = scalar_lea.vmem %s1133_s1, %s1015_s24 }
  0x10   : > { %v278_v0 = vld [vmem:[%s263_s27] sm:$0xff]  ;;  %v279_v2 = vld [vmem:[%s263_s27 + $0x8] sm:$0xff]  ;;  %874 = vmatprep.subr.bf16.mxu0 %v970_v15  ;;  %s275_s9 = scalar_lea.vmem %s1138_s6, %s1015_s24 }
  0x11   : > { %v281_v1 = vsel %vm280_vm0, %v278_v0, 0.0  ;;  %v284_v3 = vsel %vm280_vm0, %v279_v2, 0.0  ;;  %v326_v34 = vld [vmem:[%s269_s18] sm:$0xff]  ;;  %v327_v35 = vld [vmem:[%s269_s18 + $0x8] sm:$0xff]  ;;  %885 = vmatpush3.bf16.msra.mxu1 %v932_v42 }
  0x12   : > { %282 = vadd.xlane.f32.xlu0 %v281_v1  ;;  %886 = vmatprep.subr.bf16.mxu1 %v970_v15  ;;  %v937_v1 = vld [vmem:[%s1136_s4 + $0x58] sm:$0xff]   ;;  %v840_v42 = vld [vmem:[%s1137_s5 + $0x3] ss:$0 sm:$0xff] }
  0x13   : > { %875 = vmatpush3.bf16.msra.mxu0 %v929_v18 }
  0x14   : > { %892 = vmatprep.subr.bf16.mxu0 %v970_v15 }
  0x15   : > { %887 = vmatpush3.bf16.msra.mxu1 %v933_v43 }
  0x16   : > { %285 = vadd.xlane.f32.xlu0 %v284_v3  ;;  %904 = vmatprep.subr.bf16.mxu1 %v970_v15 }
  0x9f   : > { %v283_v4 = vpop.xlane.xlu0 %282 }
  0xa0   : > { %v288_v5 = vmul.f32 0.015625, %v283_v4 }
  0xa2   : > { %v290_v6 = vsub.f32 %v278_v0, %v288_v5  ;;  %v936_v0 = vld [vmem:[%s1136_s4 + $0x50] sm:$0xff]  }
  0xa3   : > { %v286_v7 = vpop.xlane.xlu0 %285 }
  0xa4   : > { %v289_v8 = vmul.f32 0.015625, %v286_v7  ;;  %v292_v9 = vmul.f32 %v290_v6, %v290_v6 }
  0xa6   : > { %v291_v10 = vsub.f32 %v279_v2, %v289_v8  ;;  %v294_v11 = vsel %vm280_vm0, %v292_v9, 0.0  ;;  %v810_v2 = vld [vmem:[%s1137_s5 + $0x1] ss:$0 sm:$0xff] }
  0xa7   : > { %295 = vadd.xlane.f32.xlu1 %v294_v11 }
  0xa8   : > { %v293_v12 = vmul.f32 %v291_v10, %v291_v10 }
  0xaa   : > { %v297_v13 = vsel %vm280_vm0, %v293_v12, 0.0 }
  0xab   : > { %298 = vadd.xlane.f32.xlu1 %v297_v13 }
 0x134   : > { %v296_v19 = vpop.xlane.xlu1 %295 }
 0x135   : > { %v300_v20 = vmul.f32 0.015625, %v296_v19 }
 0x137   : > { %v302_v21 = vadd.f32 1e-05, %v300_v20 }
 0x138   : > { %v299_v22 = vpop.xlane.xlu1 %298 }
 0x139   : > { %942 = vrsqrt.f32 %v302_v21  ;;  %v301_v23 = vmul.f32 0.015625, %v299_v22  ;;  %v938_v21 = vld [vmem:[%s1136_s4 + $0x60] sm:$0xff]   ;;  %v939_v22 = vld [vmem:[%s1136_s4 + $0x68] sm:$0xff]  }
 0x13b   : > { %v303_v24 = vadd.f32 1e-05, %v301_v23  ;;  %v940_v23 = vld [vmem:[%s1136_s4 + $0x70] sm:$0xff]  }
 0x13d   : > { %944 = vrsqrt.f32 %v303_v24  ;;  %v941_v24 = vld [vmem:[%s1136_s4 + $0x78] sm:$0xff]  }
 0x143   : > { %v943_v25 = vpop.eup %942 }
 0x144   : > { %v306_v27 = vmul.f32 %v943_v25, %v290_v6  ;;  %v825_v25 = vld [vmem:[%s1137_s5 + $0x2] ss:$0 sm:$0xff] }
 0x146   : > { %v315_v28 = vmul.f32 %v793_v26, %v306_v27 }
 0x147   : > { %v945_v29 = vpop.eup %944 }
 0x148   : > { %v307_v31 = vmul.f32 %v945_v29, %v291_v10  ;;  %v324_v33 = vadd.f32 %v794_v30, %v315_v28 }
 0x14a   : > { %v316_v32 = vmul.f32 %v793_v26, %v307_v31  ;;  %v328_v37 = vadd.f32 %v326_v34, %v324_v33 }
 0x14c   : > { %v325_v36 = vadd.f32 %v794_v30, %v316_v32 }
 0x14e   : > { %v329_v38 = vadd.f32 %v327_v35, %v325_v36 }
 0x150   : > { %v330_v39 = vpack.c.bf16 %v329_v38, %v328_v37 }
 0x152   : > { %877 = vmatmul.mubr.msk.bf16.vlgmr.msra.gmra.mrb[0].mxu0 %vm280_vm0, %v330_v39 }
 0x153   : > { %900 = vmatprep.mubr.msk.bf16.mxu0 %vm971_vm1, %v970_v15  ;;  %893 = vmatpush3.bf16.msra.mxu0 %v934_v62 }
 0x154   : > { %894 = vmatprep.subr.bf16.mxu0 %v970_v15 }
 0x157   : > { %895 = vmatpush3.bf16.msra.mxu0 %v935_v63 }
 0x158   : > { %896 = vmatprep.subr.bf16.mxu0 %v970_v15 }
 0x15b   : > { %897 = vmatpush3.bf16.msra.mxu0 %v936_v0 }
 0x15c   : > { %898 = vmatprep.subr.bf16.mxu0 %v970_v15 }
 0x15f   : > { %899 = vmatpush3.bf16.msra.mxu0 %v937_v1 }
 0x225   : > { %v407_v45 = vpop.f32.mrb[0].mxu0 }
 0x226   : > { %v408_v46 = vadd.f32 %v795_v44, %v407_v45  ;;  %v878_v47 = vpop.f32.mrb[1].mxu0 }
 0x227   : > { %v410_v48 = vpop.f32.mrb[2].mxu0 }
 0x228   : > { %v416_v49 = vmul.f32 0.70710677, %v408_v46  ;;  %v411_v50 = vadd.f32 %v795_v44, %v410_v48  ;;  %v879_v51 = vpop.f32.mrb[3].mxu0  ;;  %v414_v56 = vmul.f32 0.5, %v408_v46 }
 0x22a   : > { %946 = verf.f32 %v416_v49  ;;  %v417_v52 = vmul.f32 0.70710677, %v411_v50  ;;  %v415_v57 = vmul.f32 0.5, %v411_v50 }
 0x22c   : > { %948 = verf.f32 %v417_v52 }
 0x234   : > { %v947_v53 = vpop.eup %946 }
 0x235   : > { %v420_v54 = vadd.f32 1.0, %v947_v53 }
 0x236   : > { %v949_v55 = vpop.eup %948 }
 0x237   : > { %v421_v58 = vadd.f32 1.0, %v949_v55  ;;  %v422_v59 = vmul.f32 %v420_v54, %v414_v56 }
 0x239   : > { %v423_v60 = vmul.f32 %v421_v58, %v415_v57 }
 0x23b   : > { %v424_v61 = vpack.c.bf16 %v423_v60, %v422_v59 }
 0x23d   : > { %889 = vmatmul.mubr.msk.bf16.vlgmr.msra.gmra.mrb[0].mxu1 %vm280_vm0, %v424_v61 }
 0x23e   : > { %912 = vmatprep.mubr.msk.bf16.mxu1 %vm971_vm1, %v970_v15  ;;  %905 = vmatpush3.bf16.msra.mxu1 %v938_v21 }
 0x23f   : > { %906 = vmatprep.subr.bf16.mxu1 %v970_v15 }
 0x242   : > { %907 = vmatpush3.bf16.msra.mxu1 %v939_v22 }
 0x243   : > { %908 = vmatprep.subr.bf16.mxu1 %v970_v15 }
 0x246   : > { %909 = vmatpush3.bf16.msra.mxu1 %v940_v23 }
 0x247   : > { %910 = vmatprep.subr.bf16.mxu1 %v970_v15 }
 0x24a   : > { %911 = vmatpush3.bf16.msra.mxu1 %v941_v24 }
 0x310   : > { %v503_v3 = vpop.f32.mrb[0].mxu1 }
 0x311   : > { %v504_v4 = vadd.f32 %v810_v2, %v503_v3  ;;  %v890_v5 = vpop.f32.mrb[1].mxu1 }
 0x312   : > { %v506_v6 = vpop.f32.mrb[2].mxu1 }
 0x313   : > { %v512_v7 = vmul.f32 0.70710677, %v504_v4  ;;  %v507_v8 = vadd.f32 %v810_v2, %v506_v6  ;;  %v891_v9 = vpop.f32.mrb[3].mxu1  ;;  %v510_v14 = vmul.f32 0.5, %v504_v4 }
 0x315   : > { %950 = verf.f32 %v512_v7  ;;  %v513_v10 = vmul.f32 0.70710677, %v507_v8  ;;  %v511_v16 = vmul.f32 0.5, %v507_v8 }
 0x317   : > { %952 = verf.f32 %v513_v10 }
 0x31f   : > { %v951_v11 = vpop.eup %950 }
 0x320   : > { %v516_v12 = vadd.f32 1.0, %v951_v11 }
 0x321   : > { %v953_v13 = vpop.eup %952 }
 0x322   : > { %v517_v17 = vadd.f32 1.0, %v953_v13  ;;  %v518_v18 = vmul.f32 %v516_v12, %v510_v14 }
 0x324   : > { %v519_v19 = vmul.f32 %v517_v17, %v511_v16 }
 0x326   : > { %v520_v20 = vpack.c.bf16 %v519_v19, %v518_v18 }
 0x328   : > { %901 = vmatmul.mubr.msk.bf16.vlgmr.msra.gmra.mrb[4].mxu0 %vm280_vm0, %v520_v20 }
 0x3fb   : > { %v599_v26 = vpop.f32.mrb[4].mxu0 }
 0x3fc   : > { %v600_v27 = vadd.f32 %v825_v25, %v599_v26  ;;  %v902_v28 = vpop.f32.mrb[5].mxu0 }
 0x3fd   : > { %v602_v29 = vpop.f32.mrb[6].mxu0 }
 0x3fe   : > { %v608_v30 = vmul.f32 0.70710677, %v600_v27  ;;  %v603_v31 = vadd.f32 %v825_v25, %v602_v29  ;;  %v903_v32 = vpop.f32.mrb[7].mxu0  ;;  %v606_v36 = vmul.f32 0.5, %v600_v27 }
 0x400   : > { %954 = verf.f32 %v608_v30  ;;  %v609_v33 = vmul.f32 0.70710677, %v603_v31  ;;  %v607_v37 = vmul.f32 0.5, %v603_v31 }
 0x402   : > { %956 = verf.f32 %v609_v33 }
 0x40a   : > { %v955_v15 = vpop.eup %954 }
 0x40b   : > { %v612_v34 = vadd.f32 1.0, %v955_v15 }
 0x40c   : > { %v957_v35 = vpop.eup %956 }
 0x40d   : > { %v613_v38 = vadd.f32 1.0, %v957_v35  ;;  %v614_v39 = vmul.f32 %v612_v34, %v606_v36 }
 0x40f   : > { %v615_v40 = vmul.f32 %v613_v38, %v607_v37 }
 0x411   : > { %v616_v41 = vpack.c.bf16 %v615_v40, %v614_v39 }
 0x413   : > { %913 = vmatmul.mubr.msk.bf16.vlgmr.msra.gmra.mrb[4].mxu1 %vm280_vm0, %v616_v41 }
 0x4e6   : > { %v695_v43 = vpop.f32.mrb[4].mxu1 }
 0x4e7   : > { %v696_v44 = vadd.f32 %v840_v42, %v695_v43  ;;  %v914_v45 = vpop.f32.mrb[5].mxu1 }
 0x4e8   : > { %v698_v46 = vpop.f32.mrb[6].mxu1 }
 0x4e9   : > { %v704_v47 = vmul.f32 0.70710677, %v696_v44  ;;  %v699_v48 = vadd.f32 %v840_v42, %v698_v46  ;;  %v915_v49 = vpop.f32.mrb[7].mxu1  ;;  %v702_v52 = vmul.f32 0.5, %v696_v44 }
 0x4eb   : > { %958 = verf.f32 %v704_v47  ;;  %v705_v50 = vmul.f32 0.70710677, %v699_v48  ;;  %v703_v56 = vmul.f32 0.5, %v699_v48 }
 0x4ed   : > { %960 = verf.f32 %v705_v50 }
 0x4f5   : > { %v959_v51 = vpop.eup %958 }
 0x4f6   : > { %v708_v53 = vadd.f32 1.0, %v959_v51 }
 0x4f7   : > { %v961_v54 = vpop.eup %960 }
 0x4f8   : > { %v710_v55 = vmul.f32 %v708_v53, %v702_v52  ;;  %v709_v57 = vadd.f32 1.0, %v961_v54 }
 0x4fa   : > { %712 = vst.msk [vmem:[%s275_s9] sm:$0xff] %vm280_vm0, %v710_v55  ;;  %v711_v58 = vmul.f32 %v709_v57, %v703_v56 }
 0x4fc   : > { %713 = vst.msk [vmem:[%s275_s9 + $0x8] sm:$0xff] %vm280_vm0, %v711_v58 }
 0x4fd PF: > { %s16_s21 = sadd.s32 1, %s968_s21  }
 0x4fe   : > { %p13_p4 = scmp.ge.s32.totalorder %s16_s21, 4  }
 0x500   :  { %15 = sbr.rel (!%p13_p4) target bundleno = 1 (0x1), region = 83 }

</bundles_post_ra>
